<compile_context>
chip_gen: v7x
topology: tpu7x:2x2x1
jax: 0.10.0
libtpu: 0.0.40
codegen_flags: <defaults>
</compile_context>

<pallas_src>
import functools

import jax
import jax.numpy as jnp
from jax.experimental import pallas as pl
from jax.experimental.pallas import tpu as pltpu


def _sdf_kernel(v_ref, gp_ref, phi_ref, c_ref, s_ref, *,
                tau, scale_factor, v_chunk, num_chunks, g_tile, num_gtiles, eps):
    # v_ref : (1, Vp, 3) one person's (padded) vertices at one timestep
    # gp_ref: (3, Gc)    voxel-center coordinates (x, y, z rows)
    # TODO(synk): the original _C.sdf CUDA extension rasterizes mesh triangles into a
    # signed (positive-inside) distance field; phi here is approximated as
    # relu(tau - distance_to_nearest_vertex) since that extension has no Pallas port.

    # --- fused 3D bounding box (min/max over vertices), chunked over V ---
    def bbox_body(ci, carry):
        bmin, bmax = carry
        off = pl.multiple_of(ci * v_chunk, v_chunk)
        chunk = v_ref[0, pl.ds(off, v_chunk), :]                       # (Vc, 3)
        return (jnp.minimum(bmin, jnp.min(chunk, axis=0, keepdims=True)),
                jnp.maximum(bmax, jnp.max(chunk, axis=0, keepdims=True)))

    big = jnp.full((1, 3), 3.0e38, jnp.float32)
    vmin, vmax = jax.lax.fori_loop(0, num_chunks, bbox_body, (big, -big))
    center = 0.5 * (vmin + vmax)                                       # (1, 3)
    extent = jnp.max(vmax - vmin, axis=1, keepdims=True)               # (1, 1)
    scale = jnp.maximum((1.0 + scale_factor) * 0.5 * extent, eps)      # (1, 1)
    inv_s = 1.0 / scale
    cx = center[:, 0:1]
    cy = center[:, 1:2]
    cz = center[:, 2:3]

    # --- squared distance of every voxel center to the nearest normalized vertex ---
    # Voxel (lane) axis tiled to g_tile=128 and vertex (sublane) axis to v_chunk=64 so
    # the (Vc, Gt) intermediates (~8 vregs each) never spill to VMEM.
    for jt in range(num_gtiles):
        g0 = jt * g_tile
        gx = gp_ref[0:1, g0:g0 + g_tile]                               # (1, Gt)
        gy = gp_ref[1:2, g0:g0 + g_tile]
        gz = gp_ref[2:3, g0:g0 + g_tile]

        def d2_body(ci, dmin2):
            off = pl.multiple_of(ci * v_chunk, v_chunk)
            chunk = v_ref[0, pl.ds(off, v_chunk), :]                   # (Vc, 3)
            vx = (chunk[:, 0:1] - cx) * inv_s                          # (Vc, 1)
            vy = (chunk[:, 1:2] - cy) * inv_s
            vz = (chunk[:, 2:3] - cz) * inv_s
            d = vx - gx
            acc = d * d
            d = vy - gy
            acc = acc + d * d
            d = vz - gz
            acc = acc + d * d                                          # (Vc, Gt)
            return jnp.minimum(dmin2, jnp.min(acc, axis=0, keepdims=True))

        dmin2 = jax.lax.fori_loop(0, num_chunks, d2_body,
                                  jnp.full((1, g_tile), 1.0e30, jnp.float32))
        phi_ref[0, :, g0:g0 + g_tile] = jnp.maximum(tau - jnp.sqrt(dmin2), 0.0)

    c_ref[...] = center.reshape(1, 1, 3)
    s_ref[...] = scale.reshape(1, 1, 1)


def _loss_kernel(phi_ref, verts_ref, c_ref, s_ref, out_ref, *,
                 G, N, V, Vp, MC, NL):
    # Grid = (T, n_chunks); program (t, c) handles one lane-dense chunk of ALL humans'
    # vertices and accumulates, for every reference human i (static unrolled loop),
    # the sum of phi_i trilinearly sampled at the other humans' vertices.
    #   phi_ref  : (1, N, G*G, G)  all SDF volumes at time t (rows = h*G + d, cols = w)
    #   verts_ref: (1, 3, MC)      chunk of all humans' vertices (lane-dense)
    #   c_ref    : (1, N, 3)  bbox centers ;  s_ref: (1, N, 1) bbox scales
    #   out_ref  : (1, 1, NL)      per-reference-human partial sums (lanes 0..N-1)
    c_idx = pl.program_id(1)
    half = 0.5 * (G - 1.0)

    gidx = jax.lax.broadcasted_iota(jnp.int32, (1, MC), 1) + c_idx * MC

    # Real (non-padding) vertices; independent of the reference human -> hoisted.
    valid = jnp.zeros((1, MC), jnp.float32)
    for n in range(N):
        lo = n * Vp
        valid = valid + jnp.where((gidx >= lo) & (gidx < lo + V), 1.0, 0.0)

    gl = jax.lax.broadcasted_iota(jnp.int32, (G, MC), 0).astype(jnp.float32)
    lane = jax.lax.broadcasted_iota(jnp.int32, (1, NL), 1)

    cen = c_ref[0]                                   # (N, 3)
    sca = s_ref[0]                                   # (N, 1)

    acc = jnp.zeros((1, NL), jnp.float32)
    for i in range(N):                               # N is small and static
        a = half / sca[i:i + 1, 0:1]                 # (1, 1)

        # tent weights == grid_sample(align_corners=True, padding_mode='zeros');
        # out-of-range coordinates get zero weight automatically.
        fx = (verts_ref[0, 0:1, :] - cen[i:i + 1, 0:1]) * a + half
        wx = jnp.maximum(1.0 - jnp.abs(gl - fx), 0.0)          # (G, MC)
        fy = (verts_ref[0, 1:2, :] - cen[i:i + 1, 1:2]) * a + half
        wy = jnp.maximum(1.0 - jnp.abs(gl - fy), 0.0)

        phi_i = phi_ref[0, i]                                  # (G*G, G)
        # W axis on the MXU per H row-group: keeps intermediates at (G, MC).
        b = jnp.dot(phi_i[0:G, :], wx,
                    preferred_element_type=jnp.float32) * wy[0:1, :]
        for h in range(1, G):
            b = b + jnp.dot(phi_i[h * G:(h + 1) * G, :], wx,
                            preferred_element_type=jnp.float32) * wy[h:h + 1, :]

        fz = (verts_ref[0, 2:3, :] - cen[i:i + 1, 2:3]) * a + half
        wz = jnp.maximum(1.0 - jnp.abs(gl - fz), 0.0)
        sampled = jnp.sum(b * wz, axis=0, keepdims=True)       # (1, MC)

        # exclude the reference human's own vertices (and all padding)
        keep = jnp.where((gidx < i * Vp) | (gidx >= (i + 1) * Vp), valid, 0.0)
        partial = jnp.sum(sampled * keep)                      # scalar
        acc = acc + jnp.where(lane == i, partial, 0.0)

    @pl.when(c_idx == 0)
    def _():
        out_ref[...] = jnp.zeros_like(out_ref)

    out_ref[...] += acc.reshape(1, 1, NL)


def collision_loss(vertices_dict, mesh_faces, grid_size=8, scale_factor=0.2,
                   loss_weight=1.0):
    """JAX/Pallas equivalent of CollisionLoss.forward (per-human mean over time,
    scaled by loss_weight)."""
    # TODO(synk): mesh_faces is only consumed by the _C.sdf CUDA extension in the
    # original module; the Pallas SDF approximation uses the vertex cloud only.
    del mesh_faces
    names = list(vertices_dict.keys())
    N = len(names)
    verts = jnp.stack([vertices_dict[nm].astype(jnp.float32) for nm in names],
                      axis=1)                                          # (T, N, V, 3)
    T, _, V, _ = verts.shape
    G = grid_size
    Gc = G * G * G
    TN = T * N

    # Pad V to a multiple of 128 by duplicating vertex 0 (bbox and nearest-vertex
    # distance are unaffected; padded vertices are masked out of the loss).
    Vp = max(128, ((V + 127) // 128) * 128)
    if Vp != V:
        pad = jnp.broadcast_to(verts[:, :, :1, :], (T, N, Vp - V, 3))
        verts_p = jnp.concatenate([verts, pad], axis=2)
    else:
        verts_p = verts

    VC = 64                                  # vertex (sublane) chunk
    GT = 128 if Gc % 128 == 0 else Gc        # voxel (lane) tile
    n_vchunks = Vp // VC
    n_gtiles = Gc // GT

    # Voxel-center coordinates, flat order g = h*G*G + d*G + w, rows = (x, y, z).
    lin = jnp.linspace(-1.0, 1.0, G, dtype=jnp.float32)
    hh, dd, ww = jnp.meshgrid(lin, lin, lin, indexing="ij")            # index [h, d, w]
    grid_pts = jnp.stack([ww.reshape(-1), hh.reshape(-1), dd.reshape(-1)],
                         axis=0)                                       # (3, Gc)

    # TODO(synk): tau is measured in each person's normalized bbox cube (~two-voxel
    # shell), only approximating the original fixed-resolution signed SDF behavior.
    tau = 4.0 / (G - 1)

    # ---- fused bbox + SDF volume per (t, person) ----
    phi, centers, scales = pl.pallas_call(
        functools.partial(_sdf_kernel, tau=tau, scale_factor=scale_factor,
                          v_chunk=VC, num_chunks=n_vchunks,
                          g_tile=GT, num_gtiles=n_gtiles, eps=1e-6),
        out_shape=(jax.ShapeDtypeStruct((TN, 1, Gc), jnp.float32),
                   jax.ShapeDtypeStruct((TN, 1, 3), jnp.float32),
                   jax.ShapeDtypeStruct((TN, 1, 1), jnp.float32)),
        grid=(TN,),
        in_specs=[pl.BlockSpec((1, Vp, 3), lambda m: (m, 0, 0)),
                  pl.BlockSpec((3, Gc), lambda m: (0, 0))],
        out_specs=(pl.BlockSpec((1, 1, Gc), lambda m: (m, 0, 0)),
                   pl.BlockSpec((1, 1, 3), lambda m: (m, 0, 0)),
                   pl.BlockSpec((1, 1, 1), lambda m: (m, 0, 0))),
        compiler_params=pltpu.CompilerParams(dimension_semantics=("parallel",)),
    )(verts_p.reshape(TN, Vp, 3), grid_pts)

    phi4 = phi.reshape(T, N, G * G, G)       # tiny relayout (T*N*G^3 floats)
    cen = centers.reshape(T, N, 3)
    sca = scales.reshape(T, N, 1)

    # Lane-dense vertex layout for the sampling kernel, padded to a fixed chunk size
    # so grid steps stay large regardless of V (no gcd-collapsed tiny tiles).
    MC = 1024
    NVp = N * Vp
    NVp_pad = ((NVp + MC - 1) // MC) * MC
    n_mchunks = NVp_pad // MC
    verts_l = jnp.transpose(verts_p, (0, 3, 1, 2)).reshape(T, 3, NVp)
    if NVp_pad != NVp:
        verts_l = jnp.pad(verts_l, ((0, 0), (0, 0), (0, NVp_pad - NVp)))

    NL = max(128, ((N + 127) // 128) * 128)  # lane-padded accumulator width

    # ---- grid_sample of phi[i] at everyone's vertices + masked reduction ----
    losses = pl.pallas_call(
        functools.partial(_loss_kernel, G=G, N=N, V=V, Vp=Vp, MC=MC, NL=NL),
        out_shape=jax.ShapeDtypeStruct((T, 1, NL), jnp.float32),
        grid=(T, n_mchunks),
        in_specs=[pl.BlockSpec((1, N, G * G, G), lambda t, c: (t, 0, 0, 0)),
                  pl.BlockSpec((1, 3, MC), lambda t, c: (t, 0, c)),
                  pl.BlockSpec((1, N, 3), lambda t, c: (t, 0, 0)),
                  pl.BlockSpec((1, N, 1), lambda t, c: (t, 0, 0))],
        out_specs=pl.BlockSpec((1, 1, NL), lambda t, c: (t, 0, 0)),
        compiler_params=pltpu.CompilerParams(
            dimension_semantics=("parallel", "arbitrary")),
    )(phi4, verts_l, cen, sca)

    # Reference semantics: cur_loss.sum(-1).mean(0) = (sum over non-reference
    # vertices) / num_humans, then mean over timesteps, scaled by loss_weight.
    per_t = losses[:, 0, :N] / N                                       # (T, N)
    return {nm: jnp.mean(per_t[:, i]) * loss_weight
            for i, nm in enumerate(names)}


if __name__ == "__main__":
    key = jax.random.PRNGKey(0)
    T, N, V, G = 2, 3, 64, 8
    k1, k2 = jax.random.split(key)

    base = jax.random.uniform(k1, (T, N, V, 3), jnp.float32, -0.5, 0.5)
    # offset the humans so their bodies partially overlap (non-trivial collision)
    offsets = jnp.array([[0.0, 0.0, 0.0],
                         [0.3, 0.0, 0.0],
                         [0.0, 0.3, 0.0]], jnp.float32)
    verts = base + offsets[None, :, None, :]

    names = ["aria01", "aria02", "aria03"]
    vertices_dict = {nm: verts[:, i] for i, nm in enumerate(names)}    # each (T, V, 3)
    mesh_faces = jax.random.randint(k2, (128, 3), 0, V).astype(jnp.int32)

    loss_dict = collision_loss(vertices_dict, mesh_faces, grid_size=G,
                               scale_factor=0.2, loss_weight=1.0)
    for nm in names:
        jax.block_until_ready(loss_dict[nm])
    print("KERNEL_OK")
</pallas_src>

<mosaic_0001>
module attributes {stable_mosaic.version = 11 : i64} {
  func.func @_sdf_kernel(%arg0: i32, %arg1: memref<1x128x3xf32, #tpu.memory_space<vmem>>, %arg2: memref<3x512xf32, #tpu.memory_space<vmem>>, %arg3: memref<1x1x512xf32, #tpu.memory_space<vmem>>, %arg4: memref<1x1x3xf32, #tpu.memory_space<vmem>>, %arg5: memref<1x1x1xf32, #tpu.memory_space<vmem>>) attributes {dimension_semantics = [#tpu.dimension_semantics<parallel>], iteration_bounds = array<i64: 6>, scalar_prefetch = 0 : i64, scratch_operands = 0 : i64, tpu.core_type = #tpu.core_type<tc>, window_params = [{transform_indices = @transform_0, window_bounds = array<i64: 1, 128, 3>}, {pipeline_mode = #tpu.pipeline_mode<synchronous>, transform_indices = @transform_1, window_bounds = array<i64: 3, 512>}, {transform_indices = @transform_2, window_bounds = array<i64: 1, 1, 512>}, {transform_indices = @transform_3, window_bounds = array<i64: 1, 1, 3>}, {transform_indices = @transform_4, window_bounds = array<i64: 1, 1, 1>}]} {
    %cst = arith.constant 3.000000e+38 : f32
    %0 = vector.broadcast %cst : f32 to vector<1x3xf32>
    %cst_0 = arith.constant 0.000000e+00 : f32
    %1 = vector.broadcast %cst_0 : f32 to vector<1x3xf32>
    %2 = arith.subf %1, %0 : vector<1x3xf32>
    %c0_i32 = arith.constant 0 : i32
    %c2_i32 = arith.constant 2 : i32
    %3 = arith.addi %c0_i32, %c2_i32 : i32
    %c1_i32 = arith.constant 1 : i32
    %4:2 = scf.for %arg6 = %c0_i32 to %3 step %c1_i32 iter_args(%arg7 = %0, %arg8 = %2) -> (vector<1x3xf32>, vector<1x3xf32>)  : i32 {
      %c64_i32 = arith.constant 64 : i32
      %80 = arith.muli %arg6, %c64_i32 : i32
      %81 = tpu.assume_multiple %80, 64 : i32
      %c0_71 = arith.constant 0 : index
      %82 = arith.index_cast %81 : i32 to index
      %c0_72 = arith.constant 0 : index
      %83 = vector.load %arg1[%c0_71, %82, %c0_72] : memref<1x128x3xf32, #tpu.memory_space<vmem>>, vector<1x64x3xf32>
      %84 = vector.shape_cast %83 : vector<1x64x3xf32> to vector<64x3xf32>
      %cst_73 = arith.constant dense<0x7F800000> : vector<3xf32>
      %85 = vector.multi_reduction <minimumf>, %84, %cst_73 [0] : vector<64x3xf32> to vector<3xf32>
      %86 = vector.shape_cast %85 : vector<3xf32> to vector<1x3xf32>
      %87 = arith.minimumf %arg7, %86 : vector<1x3xf32>
      %cst_74 = arith.constant dense<0xFF800000> : vector<3xf32>
      %88 = vector.multi_reduction <maximumf>, %84, %cst_74 [0] : vector<64x3xf32> to vector<3xf32>
      %89 = vector.shape_cast %88 : vector<3xf32> to vector<1x3xf32>
      %90 = arith.maximumf %arg8, %89 : vector<1x3xf32>
      scf.yield %87, %90 : vector<1x3xf32>, vector<1x3xf32>
    }
    %c2_i32_1 = arith.constant 2 : i32
    %5 = arith.addf %4#0, %4#1 : vector<1x3xf32>
    %cst_2 = arith.constant 5.000000e-01 : f32
    %6 = vector.broadcast %cst_2 : f32 to vector<1x3xf32>
    %7 = arith.mulf %6, %5 : vector<1x3xf32>
    %8 = arith.subf %4#1, %4#0 : vector<1x3xf32>
    %cst_3 = arith.constant dense<0xFF800000> : vector<1xf32>
    %9 = vector.multi_reduction <maximumf>, %8, %cst_3 [1] : vector<1x3xf32> to vector<1xf32>
    %10 = vector.shape_cast %9 : vector<1xf32> to vector<1x1xf32>
    %cst_4 = arith.constant 6.000000e-01 : f32
    %11 = vector.broadcast %cst_4 : f32 to vector<1x1xf32>
    %12 = arith.mulf %11, %10 : vector<1x1xf32>
    %cst_5 = arith.constant 9.99999997E-7 : f32
    %13 = vector.broadcast %cst_5 : f32 to vector<1x1xf32>
    %14 = arith.maximumf %12, %13 : vector<1x1xf32>
    %cst_6 = arith.constant 1.000000e+00 : f32
    %15 = vector.broadcast %cst_6 : f32 to vector<1x1xf32>
    %16 = arith.divf %15, %14 : vector<1x1xf32>
    %17 = vector.extract_strided_slice %7 {offsets = [0, 0], sizes = [1, 1], strides = [1, 1]} : vector<1x3xf32> to vector<1x1xf32>
    %18 = vector.extract_strided_slice %7 {offsets = [0, 1], sizes = [1, 1], strides = [1, 1]} : vector<1x3xf32> to vector<1x1xf32>
    %19 = vector.extract_strided_slice %7 {offsets = [0, 2], sizes = [1, 1], strides = [1, 1]} : vector<1x3xf32> to vector<1x1xf32>
    %c0 = arith.constant 0 : index
    %c0_7 = arith.constant 0 : index
    %20 = vector.load %arg2[%c0, %c0_7] : memref<3x512xf32, #tpu.memory_space<vmem>>, vector<1x128xf32>
    %c1 = arith.constant 1 : index
    %c0_8 = arith.constant 0 : index
    %21 = vector.load %arg2[%c1, %c0_8] : memref<3x512xf32, #tpu.memory_space<vmem>>, vector<1x128xf32>
    %c2 = arith.constant 2 : index
    %c0_9 = arith.constant 0 : index
    %22 = vector.load %arg2[%c2, %c0_9] : memref<3x512xf32, #tpu.memory_space<vmem>>, vector<1x128xf32>
    %cst_10 = arith.constant 1.000000e+30 : f32
    %23 = vector.broadcast %cst_10 : f32 to vector<1x128xf32>
    %c0_i32_11 = arith.constant 0 : i32
    %c2_i32_12 = arith.constant 2 : i32
    %24 = arith.addi %c0_i32_11, %c2_i32_12 : i32
    %c1_i32_13 = arith.constant 1 : i32
    %25 = scf.for %arg6 = %c0_i32_11 to %24 step %c1_i32_13 iter_args(%arg7 = %23) -> (vector<1x128xf32>)  : i32 {
      %c64_i32 = arith.constant 64 : i32
      %80 = arith.muli %arg6, %c64_i32 : i32
      %81 = tpu.assume_multiple %80, 64 : i32
      %c0_71 = arith.constant 0 : index
      %82 = arith.index_cast %81 : i32 to index
      %c0_72 = arith.constant 0 : index
      %83 = vector.load %arg1[%c0_71, %82, %c0_72] : memref<1x128x3xf32, #tpu.memory_space<vmem>>, vector<1x64x3xf32>
      %84 = vector.shape_cast %83 : vector<1x64x3xf32> to vector<64x3xf32>
      %85 = vector.extract_strided_slice %84 {offsets = [0, 0], sizes = [64, 1], strides = [1, 1]} : vector<64x3xf32> to vector<64x1xf32>
      %86 = vector.broadcast %17 : vector<1x1xf32> to vector<64x1xf32>
      %87 = arith.subf %85, %86 : vector<64x1xf32>
      %88 = vector.broadcast %16 : vector<1x1xf32> to vector<64x1xf32>
      %89 = arith.mulf %87, %88 : vector<64x1xf32>
      %90 = vector.extract_strided_slice %84 {offsets = [0, 1], sizes = [64, 1], strides = [1, 1]} : vector<64x3xf32> to vector<64x1xf32>
      %91 = vector.broadcast %18 : vector<1x1xf32> to vector<64x1xf32>
      %92 = arith.subf %90, %91 : vector<64x1xf32>
      %93 = vector.broadcast %16 : vector<1x1xf32> to vector<64x1xf32>
      %94 = arith.mulf %92, %93 : vector<64x1xf32>
      %95 = vector.extract_strided_slice %84 {offsets = [0, 2], sizes = [64, 1], strides = [1, 1]} : vector<64x3xf32> to vector<64x1xf32>
      %96 = vector.broadcast %19 : vector<1x1xf32> to vector<64x1xf32>
      %97 = arith.subf %95, %96 : vector<64x1xf32>
      %98 = vector.broadcast %16 : vector<1x1xf32> to vector<64x1xf32>
      %99 = arith.mulf %97, %98 : vector<64x1xf32>
      %100 = vector.broadcast %89 : vector<64x1xf32> to vector<64x128xf32>
      %101 = vector.broadcast %20 : vector<1x128xf32> to vector<64x128xf32>
      %102 = arith.subf %100, %101 : vector<64x128xf32>
      %103 = arith.mulf %102, %102 : vector<64x128xf32>
      %104 = vector.broadcast %94 : vector<64x1xf32> to vector<64x128xf32>
      %105 = vector.broadcast %21 : vector<1x128xf32> to vector<64x128xf32>
      %106 = arith.subf %104, %105 : vector<64x128xf32>
      %107 = arith.mulf %106, %106 : vector<64x128xf32>
      %108 = arith.addf %103, %107 : vector<64x128xf32>
      %109 = vector.broadcast %99 : vector<64x1xf32> to vector<64x128xf32>
      %110 = vector.broadcast %22 : vector<1x128xf32> to vector<64x128xf32>
      %111 = arith.subf %109, %110 : vector<64x128xf32>
      %112 = arith.mulf %111, %111 : vector<64x128xf32>
      %113 = arith.addf %108, %112 : vector<64x128xf32>
      %cst_73 = arith.constant dense<0x7F800000> : vector<128xf32>
      %114 = vector.multi_reduction <minimumf>, %113, %cst_73 [0] : vector<64x128xf32> to vector<128xf32>
      %115 = vector.shape_cast %114 : vector<128xf32> to vector<1x128xf32>
      %116 = arith.minimumf %arg7, %115 : vector<1x128xf32>
      scf.yield %116 : vector<1x128xf32>
    }
    %c2_i32_14 = arith.constant 2 : i32
    %26 = math.sqrt %25 : vector<1x128xf32>
    %cst_15 = arith.constant 0.571428597 : f32
    %27 = vector.broadcast %cst_15 : f32 to vector<1x128xf32>
    %28 = arith.subf %27, %26 : vector<1x128xf32>
    %cst_16 = arith.constant 0.000000e+00 : f32
    %29 = vector.broadcast %cst_16 : f32 to vector<1x128xf32>
    %30 = arith.maximumf %28, %29 : vector<1x128xf32>
    %c0_17 = arith.constant 0 : index
    %c0_18 = arith.constant 0 : index
    %c0_19 = arith.constant 0 : index
    %31 = vector.load %arg3[%c0_17, %c0_18, %c0_19] : memref<1x1x512xf32, #tpu.memory_space<vmem>>, vector<1x1x128xf32>
    %32 = vector.shape_cast %31 : vector<1x1x128xf32> to vector<1x128xf32>
    %33 = vector.shape_cast %30 : vector<1x128xf32> to vector<1x1x128xf32>
    tpu.vector_store %arg3[%c0_17, %c0_18, %c0_19], %33 {strides = array<i32>} : memref<1x1x512xf32, #tpu.memory_space<vmem>>, vector<1x1x128xf32>,
    %c0_20 = arith.constant 0 : index
    %c128 = arith.constant 128 : index
    %34 = vector.load %arg2[%c0_20, %c128] : memref<3x512xf32, #tpu.memory_space<vmem>>, vector<1x128xf32>
    %c1_21 = arith.constant 1 : index
    %c128_22 = arith.constant 128 : index
    %35 = vector.load %arg2[%c1_21, %c128_22] : memref<3x512xf32, #tpu.memory_space<vmem>>, vector<1x128xf32>
    %c2_23 = arith.constant 2 : index
    %c128_24 = arith.constant 128 : index
    %36 = vector.load %arg2[%c2_23, %c128_24] : memref<3x512xf32, #tpu.memory_space<vmem>>, vector<1x128xf32>
    %cst_25 = arith.constant 1.000000e+30 : f32
    %37 = vector.broadcast %cst_25 : f32 to vector<1x128xf32>
    %c0_i32_26 = arith.constant 0 : i32
    %c2_i32_27 = arith.constant 2 : i32
    %38 = arith.addi %c0_i32_26, %c2_i32_27 : i32
    %c1_i32_28 = arith.constant 1 : i32
    %39 = scf.for %arg6 = %c0_i32_26 to %38 step %c1_i32_28 iter_args(%arg7 = %37) -> (vector<1x128xf32>)  : i32 {
      %c64_i32 = arith.constant 64 : i32
      %80 = arith.muli %arg6, %c64_i32 : i32
      %81 = tpu.assume_multiple %80, 64 : i32
      %c0_71 = arith.constant 0 : index
      %82 = arith.index_cast %81 : i32 to index
      %c0_72 = arith.constant 0 : index
      %83 = vector.load %arg1[%c0_71, %82, %c0_72] : memref<1x128x3xf32, #tpu.memory_space<vmem>>, vector<1x64x3xf32>
      %84 = vector.shape_cast %83 : vector<1x64x3xf32> to vector<64x3xf32>
      %85 = vector.extract_strided_slice %84 {offsets = [0, 0], sizes = [64, 1], strides = [1, 1]} : vector<64x3xf32> to vector<64x1xf32>
      %86 = vector.broadcast %17 : vector<1x1xf32> to vector<64x1xf32>
      %87 = arith.subf %85, %86 : vector<64x1xf32>
      %88 = vector.broadcast %16 : vector<1x1xf32> to vector<64x1xf32>
      %89 = arith.mulf %87, %88 : vector<64x1xf32>
      %90 = vector.extract_strided_slice %84 {offsets = [0, 1], sizes = [64, 1], strides = [1, 1]} : vector<64x3xf32> to vector<64x1xf32>
      %91 = vector.broadcast %18 : vector<1x1xf32> to vector<64x1xf32>
      %92 = arith.subf %90, %91 : vector<64x1xf32>
      %93 = vector.broadcast %16 : vector<1x1xf32> to vector<64x1xf32>
      %94 = arith.mulf %92, %93 : vector<64x1xf32>
      %95 = vector.extract_strided_slice %84 {offsets = [0, 2], sizes = [64, 1], strides = [1, 1]} : vector<64x3xf32> to vector<64x1xf32>
      %96 = vector.broadcast %19 : vector<1x1xf32> to vector<64x1xf32>
      %97 = arith.subf %95, %96 : vector<64x1xf32>
      %98 = vector.broadcast %16 : vector<1x1xf32> to vector<64x1xf32>
      %99 = arith.mulf %97, %98 : vector<64x1xf32>
      %100 = vector.broadcast %89 : vector<64x1xf32> to vector<64x128xf32>
      %101 = vector.broadcast %34 : vector<1x128xf32> to vector<64x128xf32>
      %102 = arith.subf %100, %101 : vector<64x128xf32>
      %103 = arith.mulf %102, %102 : vector<64x128xf32>
      %104 = vector.broadcast %94 : vector<64x1xf32> to vector<64x128xf32>
      %105 = vector.broadcast %35 : vector<1x128xf32> to vector<64x128xf32>
      %106 = arith.subf %104, %105 : vector<64x128xf32>
      %107 = arith.mulf %106, %106 : vector<64x128xf32>
      %108 = arith.addf %103, %107 : vector<64x128xf32>
      %109 = vector.broadcast %99 : vector<64x1xf32> to vector<64x128xf32>
      %110 = vector.broadcast %36 : vector<1x128xf32> to vector<64x128xf32>
      %111 = arith.subf %109, %110 : vector<64x128xf32>
      %112 = arith.mulf %111, %111 : vector<64x128xf32>
      %113 = arith.addf %108, %112 : vector<64x128xf32>
      %cst_73 = arith.constant dense<0x7F800000> : vector<128xf32>
      %114 = vector.multi_reduction <minimumf>, %113, %cst_73 [0] : vector<64x128xf32> to vector<128xf32>
      %115 = vector.shape_cast %114 : vector<128xf32> to vector<1x128xf32>
      %116 = arith.minimumf %arg7, %115 : vector<1x128xf32>
      scf.yield %116 : vector<1x128xf32>
    }
    %c2_i32_29 = arith.constant 2 : i32
    %40 = math.sqrt %39 : vector<1x128xf32>
    %cst_30 = arith.constant 0.571428597 : f32
    %41 = vector.broadcast %cst_30 : f32 to vector<1x128xf32>
    %42 = arith.subf %41, %40 : vector<1x128xf32>
    %cst_31 = arith.constant 0.000000e+00 : f32
    %43 = vector.broadcast %cst_31 : f32 to vector<1x128xf32>
    %44 = arith.maximumf %42, %43 : vector<1x128xf32>
    %c0_32 = arith.constant 0 : index
    %c0_33 = arith.constant 0 : index
    %c128_34 = arith.constant 128 : index
    %45 = vector.load %arg3[%c0_32, %c0_33, %c128_34] : memref<1x1x512xf32, #tpu.memory_space<vmem>>, vector<1x1x128xf32>
    %46 = vector.shape_cast %45 : vector<1x1x128xf32> to vector<1x128xf32>
    %47 = vector.shape_cast %44 : vector<1x128xf32> to vector<1x1x128xf32>
    tpu.vector_store %arg3[%c0_32, %c0_33, %c128_34], %47 {strides = array<i32>} : memref<1x1x512xf32, #tpu.memory_space<vmem>>, vector<1x1x128xf32>,
    %c0_35 = arith.constant 0 : index
    %c256 = arith.constant 256 : index
    %48 = vector.load %arg2[%c0_35, %c256] : memref<3x512xf32, #tpu.memory_space<vmem>>, vector<1x128xf32>
    %c1_36 = arith.constant 1 : index
    %c256_37 = arith.constant 256 : index
    %49 = vector.load %arg2[%c1_36, %c256_37] : memref<3x512xf32, #tpu.memory_space<vmem>>, vector<1x128xf32>
    %c2_38 = arith.constant 2 : index
    %c256_39 = arith.constant 256 : index
    %50 = vector.load %arg2[%c2_38, %c256_39] : memref<3x512xf32, #tpu.memory_space<vmem>>, vector<1x128xf32>
    %cst_40 = arith.constant 1.000000e+30 : f32
    %51 = vector.broadcast %cst_40 : f32 to vector<1x128xf32>
    %c0_i32_41 = arith.constant 0 : i32
    %c2_i32_42 = arith.constant 2 : i32
    %52 = arith.addi %c0_i32_41, %c2_i32_42 : i32
    %c1_i32_43 = arith.constant 1 : i32
    %53 = scf.for %arg6 = %c0_i32_41 to %52 step %c1_i32_43 iter_args(%arg7 = %51) -> (vector<1x128xf32>)  : i32 {
      %c64_i32 = arith.constant 64 : i32
      %80 = arith.muli %arg6, %c64_i32 : i32
      %81 = tpu.assume_multiple %80, 64 : i32
      %c0_71 = arith.constant 0 : index
      %82 = arith.index_cast %81 : i32 to index
      %c0_72 = arith.constant 0 : index
      %83 = vector.load %arg1[%c0_71, %82, %c0_72] : memref<1x128x3xf32, #tpu.memory_space<vmem>>, vector<1x64x3xf32>
      %84 = vector.shape_cast %83 : vector<1x64x3xf32> to vector<64x3xf32>
      %85 = vector.extract_strided_slice %84 {offsets = [0, 0], sizes = [64, 1], strides = [1, 1]} : vector<64x3xf32> to vector<64x1xf32>
      %86 = vector.broadcast %17 : vector<1x1xf32> to vector<64x1xf32>
      %87 = arith.subf %85, %86 : vector<64x1xf32>
      %88 = vector.broadcast %16 : vector<1x1xf32> to vector<64x1xf32>
      %89 = arith.mulf %87, %88 : vector<64x1xf32>
      %90 = vector.extract_strided_slice %84 {offsets = [0, 1], sizes = [64, 1], strides = [1, 1]} : vector<64x3xf32> to vector<64x1xf32>
      %91 = vector.broadcast %18 : vector<1x1xf32> to vector<64x1xf32>
      %92 = arith.subf %90, %91 : vector<64x1xf32>
      %93 = vector.broadcast %16 : vector<1x1xf32> to vector<64x1xf32>
      %94 = arith.mulf %92, %93 : vector<64x1xf32>
      %95 = vector.extract_strided_slice %84 {offsets = [0, 2], sizes = [64, 1], strides = [1, 1]} : vector<64x3xf32> to vector<64x1xf32>
      %96 = vector.broadcast %19 : vector<1x1xf32> to vector<64x1xf32>
      %97 = arith.subf %95, %96 : vector<64x1xf32>
      %98 = vector.broadcast %16 : vector<1x1xf32> to vector<64x1xf32>
      %99 = arith.mulf %97, %98 : vector<64x1xf32>
      %100 = vector.broadcast %89 : vector<64x1xf32> to vector<64x128xf32>
      %101 = vector.broadcast %48 : vector<1x128xf32> to vector<64x128xf32>
      %102 = arith.subf %100, %101 : vector<64x128xf32>
      %103 = arith.mulf %102, %102 : vector<64x128xf32>
      %104 = vector.broadcast %94 : vector<64x1xf32> to vector<64x128xf32>
      %105 = vector.broadcast %49 : vector<1x128xf32> to vector<64x128xf32>
      %106 = arith.subf %104, %105 : vector<64x128xf32>
      %107 = arith.mulf %106, %106 : vector<64x128xf32>
      %108 = arith.addf %103, %107 : vector<64x128xf32>
      %109 = vector.broadcast %99 : vector<64x1xf32> to vector<64x128xf32>
      %110 = vector.broadcast %50 : vector<1x128xf32> to vector<64x128xf32>
      %111 = arith.subf %109, %110 : vector<64x128xf32>
      %112 = arith.mulf %111, %111 : vector<64x128xf32>
      %113 = arith.addf %108, %112 : vector<64x128xf32>
      %cst_73 = arith.constant dense<0x7F800000> : vector<128xf32>
      %114 = vector.multi_reduction <minimumf>, %113, %cst_73 [0] : vector<64x128xf32> to vector<128xf32>
      %115 = vector.shape_cast %114 : vector<128xf32> to vector<1x128xf32>
      %116 = arith.minimumf %arg7, %115 : vector<1x128xf32>
      scf.yield %116 : vector<1x128xf32>
    }
    %c2_i32_44 = arith.constant 2 : i32
    %54 = math.sqrt %53 : vector<1x128xf32>
    %cst_45 = arith.constant 0.571428597 : f32
    %55 = vector.broadcast %cst_45 : f32 to vector<1x128xf32>
    %56 = arith.subf %55, %54 : vector<1x128xf32>
    %cst_46 = arith.constant 0.000000e+00 : f32
    %57 = vector.broadcast %cst_46 : f32 to vector<1x128xf32>
    %58 = arith.maximumf %56, %57 : vector<1x128xf32>
    %c0_47 = arith.constant 0 : index
    %c0_48 = arith.constant 0 : index
    %c256_49 = arith.constant 256 : index
    %59 = vector.load %arg3[%c0_47, %c0_48, %c256_49] : memref<1x1x512xf32, #tpu.memory_space<vmem>>, vector<1x1x128xf32>
    %60 = vector.shape_cast %59 : vector<1x1x128xf32> to vector<1x128xf32>
    %61 = vector.shape_cast %58 : vector<1x128xf32> to vector<1x1x128xf32>
    tpu.vector_store %arg3[%c0_47, %c0_48, %c256_49], %61 {strides = array<i32>} : memref<1x1x512xf32, #tpu.memory_space<vmem>>, vector<1x1x128xf32>,
    %c0_50 = arith.constant 0 : index
    %c384 = arith.constant 384 : index
    %62 = vector.load %arg2[%c0_50, %c384] : memref<3x512xf32, #tpu.memory_space<vmem>>, vector<1x128xf32>
    %c1_51 = arith.constant 1 : index
    %c384_52 = arith.constant 384 : index
    %63 = vector.load %arg2[%c1_51, %c384_52] : memref<3x512xf32, #tpu.memory_space<vmem>>, vector<1x128xf32>
    %c2_53 = arith.constant 2 : index
    %c384_54 = arith.constant 384 : index
    %64 = vector.load %arg2[%c2_53, %c384_54] : memref<3x512xf32, #tpu.memory_space<vmem>>, vector<1x128xf32>
    %cst_55 = arith.constant 1.000000e+30 : f32
    %65 = vector.broadcast %cst_55 : f32 to vector<1x128xf32>
    %c0_i32_56 = arith.constant 0 : i32
    %c2_i32_57 = arith.constant 2 : i32
    %66 = arith.addi %c0_i32_56, %c2_i32_57 : i32
    %c1_i32_58 = arith.constant 1 : i32
    %67 = scf.for %arg6 = %c0_i32_56 to %66 step %c1_i32_58 iter_args(%arg7 = %65) -> (vector<1x128xf32>)  : i32 {
      %c64_i32 = arith.constant 64 : i32
      %80 = arith.muli %arg6, %c64_i32 : i32
      %81 = tpu.assume_multiple %80, 64 : i32
      %c0_71 = arith.constant 0 : index
      %82 = arith.index_cast %81 : i32 to index
      %c0_72 = arith.constant 0 : index
      %83 = vector.load %arg1[%c0_71, %82, %c0_72] : memref<1x128x3xf32, #tpu.memory_space<vmem>>, vector<1x64x3xf32>
      %84 = vector.shape_cast %83 : vector<1x64x3xf32> to vector<64x3xf32>
      %85 = vector.extract_strided_slice %84 {offsets = [0, 0], sizes = [64, 1], strides = [1, 1]} : vector<64x3xf32> to vector<64x1xf32>
      %86 = vector.broadcast %17 : vector<1x1xf32> to vector<64x1xf32>
      %87 = arith.subf %85, %86 : vector<64x1xf32>
      %88 = vector.broadcast %16 : vector<1x1xf32> to vector<64x1xf32>
      %89 = arith.mulf %87, %88 : vector<64x1xf32>
      %90 = vector.extract_strided_slice %84 {offsets = [0, 1], sizes = [64, 1], strides = [1, 1]} : vector<64x3xf32> to vector<64x1xf32>
      %91 = vector.broadcast %18 : vector<1x1xf32> to vector<64x1xf32>
      %92 = arith.subf %90, %91 : vector<64x1xf32>
      %93 = vector.broadcast %16 : vector<1x1xf32> to vector<64x1xf32>
      %94 = arith.mulf %92, %93 : vector<64x1xf32>
      %95 = vector.extract_strided_slice %84 {offsets = [0, 2], sizes = [64, 1], strides = [1, 1]} : vector<64x3xf32> to vector<64x1xf32>
      %96 = vector.broadcast %19 : vector<1x1xf32> to vector<64x1xf32>
      %97 = arith.subf %95, %96 : vector<64x1xf32>
      %98 = vector.broadcast %16 : vector<1x1xf32> to vector<64x1xf32>
      %99 = arith.mulf %97, %98 : vector<64x1xf32>
      %100 = vector.broadcast %89 : vector<64x1xf32> to vector<64x128xf32>
      %101 = vector.broadcast %62 : vector<1x128xf32> to vector<64x128xf32>
      %102 = arith.subf %100, %101 : vector<64x128xf32>
      %103 = arith.mulf %102, %102 : vector<64x128xf32>
      %104 = vector.broadcast %94 : vector<64x1xf32> to vector<64x128xf32>
      %105 = vector.broadcast %63 : vector<1x128xf32> to vector<64x128xf32>
      %106 = arith.subf %104, %105 : vector<64x128xf32>
      %107 = arith.mulf %106, %106 : vector<64x128xf32>
      %108 = arith.addf %103, %107 : vector<64x128xf32>
      %109 = vector.broadcast %99 : vector<64x1xf32> to vector<64x128xf32>
      %110 = vector.broadcast %64 : vector<1x128xf32> to vector<64x128xf32>
      %111 = arith.subf %109, %110 : vector<64x128xf32>
      %112 = arith.mulf %111, %111 : vector<64x128xf32>
      %113 = arith.addf %108, %112 : vector<64x128xf32>
      %cst_73 = arith.constant dense<0x7F800000> : vector<128xf32>
      %114 = vector.multi_reduction <minimumf>, %113, %cst_73 [0] : vector<64x128xf32> to vector<128xf32>
      %115 = vector.shape_cast %114 : vector<128xf32> to vector<1x128xf32>
      %116 = arith.minimumf %arg7, %115 : vector<1x128xf32>
      scf.yield %116 : vector<1x128xf32>
    }
    %c2_i32_59 = arith.constant 2 : i32
    %68 = math.sqrt %67 : vector<1x128xf32>
    %cst_60 = arith.constant 0.571428597 : f32
    %69 = vector.broadcast %cst_60 : f32 to vector<1x128xf32>
    %70 = arith.subf %69, %68 : vector<1x128xf32>
    %cst_61 = arith.constant 0.000000e+00 : f32
    %71 = vector.broadcast %cst_61 : f32 to vector<1x128xf32>
    %72 = arith.maximumf %70, %71 : vector<1x128xf32>
    %c0_62 = arith.constant 0 : index
    %c0_63 = arith.constant 0 : index
    %c384_64 = arith.constant 384 : index
    %73 = vector.load %arg3[%c0_62, %c0_63, %c384_64] : memref<1x1x512xf32, #tpu.memory_space<vmem>>, vector<1x1x128xf32>
    %74 = vector.shape_cast %73 : vector<1x1x128xf32> to vector<1x128xf32>
    %75 = vector.shape_cast %72 : vector<1x128xf32> to vector<1x1x128xf32>
    tpu.vector_store %arg3[%c0_62, %c0_63, %c384_64], %75 {strides = array<i32>} : memref<1x1x512xf32, #tpu.memory_space<vmem>>, vector<1x1x128xf32>,
    %76 = vector.shape_cast %7 : vector<1x3xf32> to vector<1x1x3xf32>
    %c0_65 = arith.constant 0 : index
    %c0_66 = arith.constant 0 : index
    %c0_67 = arith.constant 0 : index
    %77 = vector.load %arg4[%c0_65, %c0_66, %c0_67] : memref<1x1x3xf32, #tpu.memory_space<vmem>>, vector<1x1x3xf32>
    tpu.vector_store %arg4[%c0_65, %c0_66, %c0_67], %76 {strides = array<i32>} : memref<1x1x3xf32, #tpu.memory_space<vmem>>, vector<1x1x3xf32>,
    %78 = vector.shape_cast %14 : vector<1x1xf32> to vector<1x1x1xf32>
    %c0_68 = arith.constant 0 : index
    %c0_69 = arith.constant 0 : index
    %c0_70 = arith.constant 0 : index
    %79 = vector.load %arg5[%c0_68, %c0_69, %c0_70] : memref<1x1x1xf32, #tpu.memory_space<vmem>>, vector<1x1x1xf32>
    tpu.vector_store %arg5[%c0_68, %c0_69, %c0_70], %78 {strides = array<i32>} : memref<1x1x1xf32, #tpu.memory_space<vmem>>, vector<1x1x1xf32>,
    return
  }
  func.func @transform_0(%arg0: i32) -> (i32, i32, i32) {
    %c0_i32 = arith.constant 0 : i32
    %c0_i32_0 = arith.constant 0 : i32
    %c0_i32_1 = arith.constant 0 : i32
    return %arg0, %c0_i32, %c0_i32_0 : i32, i32, i32
  }
  func.func @transform_1(%arg0: i32) -> (i32, i32) {
    %c0_i32 = arith.constant 0 : i32
    %c0_i32_0 = arith.constant 0 : i32
    %c0_i32_1 = arith.constant 0 : i32
    return %c0_i32, %c0_i32_0 : i32, i32
  }
  func.func @transform_2(%arg0: i32) -> (i32, i32, i32) {
    %c0_i32 = arith.constant 0 : i32
    %c0_i32_0 = arith.constant 0 : i32
    %c0_i32_1 = arith.constant 0 : i32
    return %arg0, %c0_i32, %c0_i32_0 : i32, i32, i32
  }
  func.func @transform_3(%arg0: i32) -> (i32, i32, i32) {
    %c0_i32 = arith.constant 0 : i32
    %c0_i32_0 = arith.constant 0 : i32
    %c0_i32_1 = arith.constant 0 : i32
    return %arg0, %c0_i32, %c0_i32_0 : i32, i32, i32
  }
  func.func @transform_4(%arg0: i32) -> (i32, i32, i32) {
    %c0_i32 = arith.constant 0 : i32
    %c0_i32_0 = arith.constant 0 : i32
    %c0_i32_1 = arith.constant 0 : i32
    return %arg0, %c0_i32, %c0_i32_0 : i32, i32, i32
  }
}

</mosaic_0001>

<bundles_post_ra>
// kernel: tpu_custom_call.1
= control target key start
LH: loop header
LB: loop body
LE: loop exit
PB: predicated region body
PF: predicated region fallthrough
CT: control target
= control target key end

     0   :  { %10 = vsyncpa [#allocation3], 0  ;;  %s2313_s0 = inlined_call_operand.vmem [shape: f32[6,128,3], index: 0, kind: input, shape index: {}]   ;;  %s2314_s1 = inlined_call_operand.vmem [shape: f32[3,512], index: 1, kind: input, shape index: {}]   ;;  %s2315_s2 = inlined_call_operand.hbm [shape: f32[6,1,512], index: 2, kind: output, shape index: {0}]   ;;  %s2316_s3 = inlined_call_operand.vmem [shape: f32[6,1,3], index: 3, kind: output, shape index: {1}]   ;;  %s2317_s4 = inlined_call_operand.vmem [shape: f32[6,1,1], index: 4, kind: output, shape index: {2}]  }
   0x1   :  { %12 = vsyncpa [#allocation3 + $0x1], 0  ;;  %s1826_s15 = smov 0   ;;  %s1828_s16 = smov 0  }
   0x2   :  { %s1830_s17 = smov 0   ;;  %s1832_s18 = smov 0  }
   0x3 LB: > { %s1847_s19 = sadd.s32 4294967295, %s1742_s18   ;;  %s1432_s20 = sadd.s32 4294967294, %s1742_s18   ;;  %s1742_s18 = sphi %s1832_s18, %s2331_s18   ;;  %s1738_s17 = sphi %s1830_s17, %s2330_s17   ;;  %s1734_s16 = sphi %s1828_s16, %s2329_s16   ;;  %s1730_s15 = sphi %s1826_s15, %s2328_s15  }
   0x4   : > { %s1851_s21 = sadd.s32 1, %s1742_s18   ;;  %s72_s22 = sadd.s32 1, %s1738_s17 }
   0x5   : > { %s69_s23 = ssub.s32 %s1742_s18, %s1851_s21  ;;  %p82_p0 = scmp.ne.s32.totalorder %s1738_s17, %s1734_s16 }
   0x6   : > { %p70_p1 = scmp.eq.s32.totalorder %s69_s23, 0  ;;  %p83_p2 = scmp.eq.s32.totalorder %s1847_s19, 5 }
   0x7   : > { %p88_p3 = scmp.ne.s32.totalorder %s1734_s16, %s1730_s15  ;;  %p89_p4 = scmp.eq.s32.totalorder %s1432_s20, 5 }
   0x8   : > { %s1862_s24 = scalar_select %p70_p1, %s1738_s17, %s72_s22  }
   0x9   : > { %p1864_p5 = por %p83_p2, %p82_p0  ;;  %p1868_p6 = por %p89_p4, %p88_p3 }
   0xa   : > { %p1435_p7 = scmp.ge.s32.totalorder %s1742_s18, 1  ;;  %p170_p8 = scmp.lt.s32.totalorder %s1742_s18, 7 }
   0xc   : > { %p171_p9 = pnand %p1435_p7, %p170_p8 }
   0xd   : > { %s189_s27 = sand.u32 (!%p171_p9), 1, %s1734_s16   ;;  %p202_p10 = scmp.lt.s32.totalorder (!%p171_p9), %s1847_s19, 5  ;;  %v1897_v0 = vmov (!%p171_p9), -3e+38   ;;  %v1899_v1 = vmov (!%p171_p9), 3e+38  }
   0xe   : > { %174 = sbr.rel (%p171_p9) target bundleno = 1152 (0x480), region = 28  ;;  %s1436_s28 = sshll.u32 (!%p171_p9), %s189_s27, 2 }
   0xf   : > { %s1895_s14 = scalar_lea.vmem (!%p171_p9), [#allocation2], %s1436_s28  ;;  %s1901_s20 = smov (!%p171_p9), 0  }
  0x15   : > { %s1879_s29 = scalar_select %p202_p10, %s1847_s19, 5 }
  0x17   : > { %s1461_s30 = sshll.u32 %s1879_s29, 7  ;;  %s209_s7 = scalar_lea.vmem %s2316_s3, %s1879_s29 }
  0x18   : > { %s1889_s10 = scalar_lea.vmem %s2313_s0, %s1461_s30  ;;  %s212_s13 = scalar_lea.vmem %s2317_s4, %s1879_s29 }
  0x19 LB: >> { %s1439_s22 = sshll.u32 %s1754_s20, 6  ;;  %vm231_vm0 = vcmask 23552   ;;  %s218_s20 = sadd.s32 1, %s1754_s20   ;;  %s1754_s20 = sphi %s1901_s20, %s218_s20   ;;  %v1750_v1 = vphi %v1899_v1, %v2321_v1   ;;  %v1746_v0 = vphi %v1897_v0, %v2320_v0  }
  0x1a   : >> { %s222_s23 = scalar_lea.vmem %s1889_s10, %s1439_s22  ;;  %p215_p11 = scmp.ge.s32.totalorder %s218_s20, 2  }
  0x1b   : >> { %v223_v2 = vld [vmem:[%s222_s23] sm:$0xff]  ;;  %v224_v3 = vld [vmem:[%s222_s23 + $0x8] sm:$0xff]  ;;  %v225_v4 = vld [vmem:[%s222_s23 + $0x10] sm:$0xff]  ;;  %s1960_s11 = smov (%p215_p11), 0  }
  0x1c   : >> { %v226_v5 = vld [vmem:[%s222_s23 + $0x18] sm:$0xff]  ;;  %v227_v6 = vld [vmem:[%s222_s23 + $0x20] sm:$0xff]  ;;  %v228_v7 = vld [vmem:[%s222_s23 + $0x28] sm:$0xff]  ;;  %v232_v8 = vsel %vm231_vm0, %v223_v2, inf  ;;  %v233_v9 = vsel %vm231_vm0, %v224_v3, inf  ;;  %v234_v10 = vsel %vm231_vm0, %v225_v4, inf }
  0x1d   : >> { %v229_v11 = vld [vmem:[%s222_s23 + $0x30] sm:$0xff]  ;;  %v230_v12 = vld [vmem:[%s222_s23 + $0x38] sm:$0xff]  ;;  %v235_v13 = vsel %vm231_vm0, %v226_v5, inf  ;;  %v236_v14 = vsel %vm231_vm0, %v227_v6, inf  ;;  %v238_v15 = vsel %vm231_vm0, %v228_v7, inf  ;;  %v254_v16 = vsel %vm231_vm0, %v223_v2, -inf }
  0x1e   : >> { %v237_v17 = vmin.f32 %v232_v8, %v236_v14  ;;  %v239_v18 = vmin.f32 %v233_v9, %v238_v15  ;;  %v240_v19 = vsel %vm231_vm0, %v229_v11, inf  ;;  %v242_v20 = vsel %vm231_vm0, %v230_v12, inf  ;;  %v1939_v58 = vld [vmem:[%s2314_s1] ss:$0 sm:$0xff] (%p215_p11)  ;;  %v1944_v59 = vld [vmem:[%s2314_s1 + $0x1] ss:$0 sm:$0xff] (%p215_p11) }
  0x1f   : >> { %v241_v21 = vmin.f32 %v234_v10, %v240_v19  ;;  %v243_v22 = vmin.f32 %v235_v13, %v242_v20  ;;  %v255_v23 = vsel %vm231_vm0, %v224_v3, -inf  ;;  %v256_v24 = vsel %vm231_vm0, %v225_v4, -inf  ;;  %v1949_v60 = vld [vmem:[%s2314_s1 + $0x2] ss:$0 sm:$0xff] (%p215_p11) }
  0x20   : >> { %v244_v25 = vmin.f32 %v237_v17, %v239_v18  ;;  %v257_v26 = vsel %vm231_vm0, %v226_v5, -inf  ;;  %v258_v27 = vsel %vm231_vm0, %v227_v6, -inf  ;;  %v260_v28 = vsel %vm231_vm0, %v228_v7, -inf }
  0x21   : >> { %v245_v29 = vmin.f32 %v241_v21, %v243_v22  ;;  %v259_v30 = vmax.f32 %v254_v16, %v258_v27  ;;  %v261_v31 = vmax.f32 %v255_v23, %v260_v28  ;;  %v262_v32 = vsel %vm231_vm0, %v229_v11, -inf }
  0x22   : >> { %v263_v33 = vmax.f32 %v256_v24, %v262_v32  ;;  %v264_v34 = vsel %vm231_vm0, %v230_v12, -inf }
  0x23   : >> { %v246_v35 = vmin.f32 %v244_v25, %v245_v29  ;;  %v265_v36 = vmax.f32 %v257_v26, %v264_v34  ;;  %v266_v37 = vmax.f32 %v259_v30, %v261_v31 }
  0x25   : >> { %v247_v38 = vrot.slane %v246_v35, 4  ;;  %v267_v39 = vmax.f32 %v263_v33, %v265_v36 }
  0x27   : >> { %v248_v40 = vmin.f32 %v246_v35, %v247_v38  ;;  %v268_v41 = vmax.f32 %v266_v37, %v267_v39 }
  0x29   : >> { %v249_v42 = vrot.slane %v248_v40, 2  ;;  %v269_v43 = vrot.slane %v268_v41, 4 }
  0x2b   : >> { %v250_v44 = vmin.f32 %v248_v40, %v249_v42  ;;  %v270_v45 = vmax.f32 %v268_v41, %v269_v43 }
  0x2d   : >> { %v251_v46 = vrot.slane %v250_v44, 1  ;;  %v271_v47 = vrot.slane %v270_v45, 2 }
  0x2f   : >> { %v252_v48 = vmin.f32 %v250_v44, %v251_v46  ;;  %v272_v49 = vmax.f32 %v270_v45, %v271_v47 }
  0x31   : >> { %v253_v50 = vmin.f32 %v1750_v1, %v252_v48   ;;  %v273_v51 = vrot.slane %v272_v49, 1  ;;  %217 = sbr.rel (!%p215_p11) target bundleno = 25 (0x19), region = 127 }
  0x33   : >> { %v274_v52 = vmax.f32 %v272_v49, %v273_v51  ;;  %v2321_v1 = vmov %v253_v50 }
  0x34   : > { %v1958_v1 = vmov (%p215_p11), 1e+30  }
  0x35   : >> { %v275_v53 = vmax.f32 %v1746_v0, %v274_v52  }
  0x37   : >> { %v2320_v0 = vmov %v275_v53  ;;  %v276_v54 = vadd.f32 (%p215_p11), %v275_v53, %v253_v50  ;;  %v278_v55 = vsub.f32 (%p215_p11), %v275_v53, %v253_v50 }
  0x39   : > { %v1933_v56 = vmul.f32 0.5, %v276_v54  ;;  %v280_v57 = vsel %vm231_vm0, %v278_v55, -inf }
  0x3a   : > { %281 = vmax.xlane.f32.xlu0 %v280_v57 }
  0xc7   : > { %v282_v61 = vpop.xlane.xlu0 %281 }
  0xc8   : > { %v1951_v62 = vmul.f32 0.6, %v282_v61 }
  0xca   : > { %v284_v63 = vmax.f32 %v1951_v62, 1e-06 }
  0xcc   : > { %1602 = vrcp.f32 %v284_v63 }
  0xd6   : > { %v1956_v0 = vpop.eup %1602 }
  0xd7 LB: >> { %v1788_v2 = vmov 0   ;;  %s1440_s12 = sshll.u32 %s1762_s11, 6  ;;  %v1789_v27 = vmov 1   ;;  %v1790_v28 = vmov 2   ;;  %s295_s11 = sadd.s32 1, %s1762_s11   ;;  %s1762_s11 = sphi %s1960_s11, %s295_s11   ;;  %v1758_v1 = vphi %v1958_v1, %v2322_v1  }
  0xd8   : >> { %1605 = vset.pattern.permute.xlu1 %v1788_v2  ;;  %1604 = vset.pattern.permute.xlu0 %v1788_v2  ;;  %s298_s20 = scalar_lea.vmem %s1889_s10, %s1440_s12  ;;  %p292_p12 = scmp.ge.s32.totalorder %s295_s11, 2  }
  0xd9   : >> { %v301_v3 = vld [vmem:[%s298_s20 + $0x10] sm:$0xff]  ;;  %v299_v4 = vld [vmem:[%s298_s20] sm:$0xff]  ;;  %v302_v5 = vld [vmem:[%s298_s20 + $0x18] sm:$0xff]  ;;  %s2040_s8 = smov (%p292_p12), 0  }
  0xda   : >> { %v309_v6 = vsub.f32 %v301_v3, %v1933_v56  ;;  %v307_v7 = vsub.f32 %v299_v4, %v1933_v56  ;;  %v310_v8 = vsub.f32 %v302_v5, %v1933_v56  ;;  %v300_v9 = vld [vmem:[%s298_s20 + $0x8] sm:$0xff]  ;;  %v303_v12 = vld [vmem:[%s298_s20 + $0x20] sm:$0xff]  ;;  %v306_v19 = vld [vmem:[%s298_s20 + $0x38] sm:$0xff] }
  0xdb   : >> { %v304_v10 = vld [vmem:[%s298_s20 + $0x28] sm:$0xff]  ;;  %v308_v11 = vsub.f32 %v300_v9, %v1933_v56  ;;  %v311_v18 = vsub.f32 %v303_v12, %v1933_v56  ;;  %v305_v20 = vld [vmem:[%s298_s20 + $0x30] sm:$0xff]  ;;  %v314_v21 = vsub.f32 %v306_v19, %v1933_v56 }
  0xdc   : >> { %v317_v13 = vmul.f32 %v1956_v0, %v309_v6  ;;  %v315_v14 = vmul.f32 %v1956_v0, %v307_v7  ;;  %v312_v15 = vsub.f32 %v304_v10, %v1933_v56  ;;  %v318_v16 = vmul.f32 %v1956_v0, %v310_v8 }
  0xdd   : >> { %v316_v17 = vmul.f32 %v1956_v0, %v308_v11  ;;  %v319_v23 = vmul.f32 %v1956_v0, %v311_v18  ;;  %v313_v24 = vsub.f32 %v305_v20, %v1933_v56  ;;  %v322_v25 = vmul.f32 %v1956_v0, %v314_v21 }
  0xde   : >> { %335 = vperm.xlu1 %1605, %v317_v13   ;;  %325 = vperm.xlu0 %1604, %v315_v14   ;;  %v320_v22 = vmul.f32 %v1956_v0, %v312_v15 }
  0xdf   : >> { %v321_v26 = vmul.f32 %v1956_v0, %v313_v24 }
  0xe2   : >> { %340 = vperm.xlu1 %1605, %v318_v16   ;;  %330 = vperm.xlu0 %1604, %v316_v17  }
  0xe6   : >> { %350 = vperm.xlu1 %1605, %v320_v22   ;;  %345 = vperm.xlu0 %1604, %v319_v23  }
  0xea   : >> { %360 = vperm.xlu1 %1605, %v322_v25   ;;  %355 = vperm.xlu0 %1604, %v321_v26  }
  0xee   : >> { %1607 = vset.pattern.permute.xlu1 %v1789_v27  ;;  %1606 = vset.pattern.permute.xlu0 %v1789_v27 }
  0xef   : >> { %388 = vperm.xlu1 %1607, %v316_v17   ;;  %384 = vperm.xlu0 %1606, %v315_v14  }
  0xf3   : >> { %392 = vperm.xlu1 %1607, %v317_v13   ;;  %396 = vperm.xlu0 %1606, %v318_v16  }
  0xf7   : >> { %400 = vperm.xlu1 %1607, %v319_v23   ;;  %404 = vperm.xlu0 %1606, %v320_v22  }
  0xfb   : >> { %408 = vperm.xlu1 %1607, %v321_v26   ;;  %412 = vperm.xlu0 %1606, %v322_v25  }
  0xff   : >> { %1608 = vset.pattern.permute.xlu1 %v1790_v28  ;;  %1609 = vset.pattern.permute.xlu0 %v1790_v28 }
 0x100   : >> { %444 = vperm.xlu1 %1608, %v315_v14   ;;  %448 = vperm.xlu0 %1609, %v316_v17  }
 0x104   : >> { %452 = vperm.xlu1 %1608, %v317_v13   ;;  %460 = vperm.xlu0 %1609, %v319_v23  }
 0x108   : >> { %456 = vperm.xlu1 %1608, %v318_v16   ;;  %468 = vperm.xlu0 %1609, %v321_v26  }
 0x10c   : >> { %464 = vperm.xlu1 %1608, %v320_v22  }
 0x110   : >> { %472 = vperm.xlu1 %1608, %v322_v25  }
 0x15d   : >> { %v336_v29 = vpop.permute.xlu1 %335  ;;  %v326_v30 = vpop.permute.xlu0 %325 }
 0x15e   : >> { %v369_v47 = vsub.f32 %v336_v29, %v1939_v58  ;;  %v367_v48 = vsub.f32 %v326_v30, %v1939_v58 }
 0x160   : >> { %v377_v61 = vmul.f32 %v369_v47, %v369_v47  ;;  %v375_v2 = vmul.f32 %v367_v48, %v367_v48 }
 0x161   : >> { %v341_v31 = vpop.permute.xlu1 %340  ;;  %v331_v32 = vpop.permute.xlu0 %330 }
 0x162   : >> { %v370_v49 = vsub.f32 %v341_v31, %v1939_v58  ;;  %v368_v50 = vsub.f32 %v331_v32, %v1939_v58 }
 0x164   : >> { %v378_v3 = vmul.f32 %v370_v49, %v370_v49  ;;  %v376_v5 = vmul.f32 %v368_v50, %v368_v50 }
 0x165   : >> { %v351_v33 = vpop.permute.xlu1 %350  ;;  %v346_v34 = vpop.permute.xlu0 %345 }
 0x166   : >> { %v372_v53 = vsub.f32 %v351_v33, %v1939_v58  ;;  %v371_v54 = vsub.f32 %v346_v34, %v1939_v58 }
 0x168   : >> { %v380_v11 = vmul.f32 %v372_v53, %v372_v53  ;;  %v379_v12 = vmul.f32 %v371_v54, %v371_v54 }
 0x169   : >> { %v361_v35 = vpop.permute.xlu1 %360  ;;  %v356_v36 = vpop.permute.xlu0 %355 }
 0x16a   : >> { %v374_v55 = vsub.f32 %v361_v35, %v1939_v58  ;;  %v373_v4 = vsub.f32 %v356_v36, %v1939_v58 }
 0x16c   : >> { %v382_v13 = vmul.f32 %v374_v55, %v374_v55  ;;  %v381_v19 = vmul.f32 %v373_v4, %v373_v4 }
 0x16e   : >> { %v389_v37 = vpop.permute.xlu1 %388  ;;  %v385_v38 = vpop.permute.xlu0 %384 }
 0x16f   : >> { %v420_v6 = vsub.f32 %v389_v37, %v1944_v59  ;;  %v419_v14 = vsub.f32 %v385_v38, %v1944_v59 }
 0x171   : >> { %v428_v23 = vmul.f32 %v420_v6, %v420_v6  ;;  %v427_v28 = vmul.f32 %v419_v14, %v419_v14 }
 0x172   : >> { %v393_v39 = vpop.permute.xlu1 %392  ;;  %v397_v40 = vpop.permute.xlu0 %396 }
 0x173   : >> { %v421_v15 = vsub.f32 %v393_v39, %v1944_v59  ;;  %v422_v16 = vsub.f32 %v397_v40, %v1944_v59  ;;  %v436_v40 = vadd.f32 %v428_v23, %v376_v5  ;;  %v435_v49 = vadd.f32 %v427_v28, %v375_v2 }
 0x175   : >> { %v429_v32 = vmul.f32 %v421_v15, %v421_v15  ;;  %v430_v33 = vmul.f32 %v422_v16, %v422_v16 }
 0x176   : >> { %v401_v41 = vpop.permute.xlu1 %400  ;;  %v405_v42 = vpop.permute.xlu0 %404 }
 0x177   : >> { %v424_v57 = vsub.f32 %v405_v42, %v1944_v59  ;;  %v423_v7 = vsub.f32 %v401_v41, %v1944_v59  ;;  %v437_v50 = vadd.f32 %v429_v32, %v377_v61 }
 0x179   : >> { %v432_v17 = vmul.f32 %v424_v57, %v424_v57  ;;  %v431_v24 = vmul.f32 %v423_v7, %v423_v7 }
 0x17a   : >> { %v409_v43 = vpop.permute.xlu1 %408  ;;  %v413_v44 = vpop.permute.xlu0 %412 }
 0x17b   : >> { %v425_v8 = vsub.f32 %v409_v43, %v1944_v59  ;;  %v426_v18 = vsub.f32 %v413_v44, %v1944_v59  ;;  %v440_v34 = vadd.f32 %v432_v17, %v380_v11  ;;  %v439_v41 = vadd.f32 %v431_v24, %v379_v12 }
 0x17c   : > { %v526_v59 = vlaneseq (%p292_p12) }
 0x17d   : >> { %v433_v25 = vmul.f32 %v425_v8, %v425_v8  ;;  %v434_v35 = vmul.f32 %v426_v18, %v426_v18 }
 0x17e   : > { %vm2031_vm3 = vcmp.lt.s32.totalorder (%p292_p12), %v526_v59, 128 }
 0x17f   : >> { %v445_v45 = vpop.permute.xlu1 %444  ;;  %v449_v46 = vpop.permute.xlu0 %448  ;;  %v441_v42 = vadd.f32 %v433_v25, %v381_v19  ;;  %v2019_v19 = vld [vmem:[%s2314_s1 + $0x4] ss:$0 sm:$0xff] (%p292_p12) }
 0x180   : >> { %v480_v20 = vsub.f32 %v449_v46, %v1949_v60  ;;  %v479_v26 = vsub.f32 %v445_v45, %v1949_v60 }
 0x182   : >> { %v488_v36 = vmul.f32 %v480_v20, %v480_v20  ;;  %v487_v43 = vmul.f32 %v479_v26, %v479_v26  ;;  %v2024_v20 = vld [vmem:[%s2314_s1 + $0x5] ss:$0 sm:$0xff] (%p292_p12) }
 0x183   : >> { %v453_v51 = vpop.permute.xlu1 %452  ;;  %v461_v52 = vpop.permute.xlu0 %460 }
 0x184   : >> { %v483_v21 = vsub.f32 %v461_v52, %v1949_v60  ;;  %v481_v29 = vsub.f32 %v453_v51, %v1949_v60  ;;  %v438_v51 = vadd.f32 %v430_v33, %v378_v3  ;;  %v442_v52 = vadd.f32 %v434_v35, %v382_v13 }
 0x185   : >> { %v496_v53 = vadd.f32 %v488_v36, %v436_v40  ;;  %v495_v4 = vadd.f32 %v487_v43, %v435_v49 }
 0x186   : >> { %v491_v37 = vmul.f32 %v483_v21, %v483_v21  ;;  %v489_v45 = vmul.f32 %v481_v29, %v481_v29 }
 0x187   : >> { %v457_v9 = vpop.permute.xlu1 %456  ;;  %v469_v10 = vpop.permute.xlu0 %468 }
 0x188   : >> { %v485_v22 = vsub.f32 %v469_v10, %v1949_v60  ;;  %v482_v30 = vsub.f32 %v457_v9, %v1949_v60  ;;  %v499_v54 = vadd.f32 %v491_v37, %v439_v41  ;;  %v497_v6 = vadd.f32 %v489_v45, %v437_v50 }
 0x18a   : >> { %v493_v38 = vmul.f32 %v485_v22, %v485_v22  ;;  %v490_v46 = vmul.f32 %v482_v30, %v482_v30  ;;  %v503_v9 = vmin.f32 %v495_v4, %v499_v54 }
 0x18b   : >> { %v465_v27 = vpop.permute.xlu1 %464 }
 0x18c   : >> { %v484_v31 = vsub.f32 %v465_v27, %v1949_v60  ;;  %v501_v55 = vadd.f32 %v493_v38, %v441_v42  ;;  %v498_v5 = vadd.f32 %v490_v46, %v438_v51  ;;  %v2038_v27 = vmov (%p292_p12), 1e+30  }
 0x18e   : >> { %v492_v39 = vmul.f32 %v484_v31, %v484_v31  ;;  %v505_v10 = vmin.f32 %v497_v6, %v501_v55 }
 0x18f   : >> { %v473_v44 = vpop.permute.xlu1 %472 }
 0x190   : >> { %v500_v47 = vadd.f32 %v492_v39, %v440_v34  ;;  %v486_v48 = vsub.f32 %v473_v44, %v1949_v60 }
 0x192   : >> { %v494_v57 = vmul.f32 %v486_v48, %v486_v48  ;;  %v504_v7 = vmin.f32 %v496_v53, %v500_v47 }
 0x194   : >> { %v502_v8 = vadd.f32 %v494_v57, %v442_v52  ;;  %v507_v12 = vmin.f32 %v503_v9, %v504_v7 }
 0x196   : >> { %v506_v11 = vmin.f32 %v498_v5, %v502_v8 }
 0x198   : >> { %v508_v14 = vmin.f32 %v505_v10, %v506_v11 }
 0x19a   : >> { %v509_v15 = vmin.f32 %v507_v12, %v508_v14 }
 0x19c   : >> { %v510_v16 = vrot.slane %v509_v15, 4 }
 0x19e   : >> { %v511_v2 = vmin.f32 %v509_v15, %v510_v16 }
 0x1a0   : >> { %v512_v61 = vrot.slane %v511_v2, 2 }
 0x1a2   : >> { %v513_v3 = vmin.f32 %v511_v2, %v512_v61 }
 0x1a4   : >> { %v514_v13 = vrot.slane %v513_v3, 1  ;;  %294 = sbr.rel (!%p292_p12) target bundleno = 215 (0xd7), region = 138 }
 0x1a6   : >> { %v515_v17 = vmin.f32 %v513_v3, %v514_v13 }
 0x1a8   : >> { %v516_v18 = vmin.f32 %v1758_v1, %v515_v17  }
 0x1aa   : >> { %v2322_v1 = vmov %v516_v18  ;;  %1610 = vrsqrt.f32 (%p292_p12), %v516_v18  ;;  %vm519_vm1 = vcmp.eq.f32.partialorder (%p292_p12), %v516_v18, inf  ;;  %v522_v22 = vand.u32 (%p292_p12), 2147483648, %v516_v18 }
 0x1ab   : > { %v2029_v1 = vld [vmem:[%s2314_s1 + $0x6] ss:$0 sm:$0xff]  ;;  %vm521_vm2 = vcmp.eq.f32.partialorder %v516_v18, 0.0 }
 0x1b4   : > { %v1611_v21 = vpop.eup %1610 }
 0x1b5   : > { %v518_v58 = vmul.f32 %v1611_v21, %v516_v18 }
 0x1b7   : > { %v520_v60 = vsel %vm519_vm1, %v516_v18, %v518_v58 }
 0x1b8   : > { %v523_v23 = vsel %vm521_vm2, %v522_v22, %v520_v60 }
 0x1b9   : > { %v524_v24 = vsub.f32 0.5714286, %v523_v23 }
 0x1bb   : > { %v525_v26 = vmax.f32 %v524_v24, 0.0 }
 0x1bd   : > { %530 = vst.msk [vmem:[%s1895_s14] sm:$0x1] %vm2031_vm3, %v525_v26 }
 0x1be LB: >> { %v1791_v28 = vmov 0   ;;  %s1444_s9 = sshll.u32 %s1770_s8, 6  ;;  %v1792_v53 = vmov 1   ;;  %v1793_v54 = vmov 2   ;;  %s539_s8 = sadd.s32 1, %s1770_s8   ;;  %s1770_s8 = sphi %s2040_s8, %s539_s8   ;;  %v1766_v27 = vphi %v2038_v27, %v2325_v27  }
 0x1bf   : >> { %1613 = vset.pattern.permute.xlu1 %v1791_v28  ;;  %1612 = vset.pattern.permute.xlu0 %v1791_v28  ;;  %s542_s11 = scalar_lea.vmem %s1889_s10, %s1444_s9  ;;  %p536_p13 = scmp.ge.s32.totalorder %s539_s8, 2  }
 0x1c0   : >> { %v545_v29 = vld [vmem:[%s542_s11 + $0x10] sm:$0xff]  ;;  %v543_v30 = vld [vmem:[%s542_s11] sm:$0xff]  ;;  %v546_v31 = vld [vmem:[%s542_s11 + $0x18] sm:$0xff]  ;;  %s2116_s5 = smov (%p536_p13), 0  }
 0x1c1   : >> { %v553_v32 = vsub.f32 %v545_v29, %v1933_v56  ;;  %v551_v33 = vsub.f32 %v543_v30, %v1933_v56  ;;  %v554_v34 = vsub.f32 %v546_v31, %v1933_v56  ;;  %v544_v35 = vld [vmem:[%s542_s11 + $0x8] sm:$0xff]  ;;  %v547_v38 = vld [vmem:[%s542_s11 + $0x20] sm:$0xff]  ;;  %v550_v45 = vld [vmem:[%s542_s11 + $0x38] sm:$0xff] }
 0x1c2   : >> { %v548_v36 = vld [vmem:[%s542_s11 + $0x28] sm:$0xff]  ;;  %v552_v37 = vsub.f32 %v544_v35, %v1933_v56  ;;  %v555_v44 = vsub.f32 %v547_v38, %v1933_v56  ;;  %v549_v46 = vld [vmem:[%s542_s11 + $0x30] sm:$0xff]  ;;  %v558_v47 = vsub.f32 %v550_v45, %v1933_v56 }
 0x1c3   : >> { %v561_v39 = vmul.f32 %v1956_v0, %v553_v32  ;;  %v559_v40 = vmul.f32 %v1956_v0, %v551_v33  ;;  %v556_v41 = vsub.f32 %v548_v36, %v1933_v56  ;;  %v562_v42 = vmul.f32 %v1956_v0, %v554_v34 }
 0x1c4   : >> { %v560_v43 = vmul.f32 %v1956_v0, %v552_v37  ;;  %v563_v49 = vmul.f32 %v1956_v0, %v555_v44  ;;  %v557_v50 = vsub.f32 %v549_v46, %v1933_v56  ;;  %v566_v51 = vmul.f32 %v1956_v0, %v558_v47 }
 0x1c5   : >> { %579 = vperm.xlu1 %1613, %v561_v39   ;;  %569 = vperm.xlu0 %1612, %v559_v40   ;;  %v564_v48 = vmul.f32 %v1956_v0, %v556_v41 }
 0x1c6   : >> { %v565_v52 = vmul.f32 %v1956_v0, %v557_v50 }
 0x1c9   : >> { %584 = vperm.xlu1 %1613, %v562_v42   ;;  %574 = vperm.xlu0 %1612, %v560_v43  }
 0x1cd   : >> { %594 = vperm.xlu1 %1613, %v564_v48   ;;  %589 = vperm.xlu0 %1612, %v563_v49  }
 0x1d1   : >> { %604 = vperm.xlu1 %1613, %v566_v51   ;;  %599 = vperm.xlu0 %1612, %v565_v52  }
 0x1d5   : >> { %1615 = vset.pattern.permute.xlu1 %v1792_v53  ;;  %1614 = vset.pattern.permute.xlu0 %v1792_v53 }
 0x1d6   : >> { %632 = vperm.xlu1 %1615, %v560_v43   ;;  %628 = vperm.xlu0 %1614, %v559_v40  }
 0x1da   : >> { %636 = vperm.xlu1 %1615, %v561_v39   ;;  %640 = vperm.xlu0 %1614, %v562_v42  }
 0x1de   : >> { %644 = vperm.xlu1 %1615, %v563_v49   ;;  %648 = vperm.xlu0 %1614, %v564_v48  }
 0x1e2   : >> { %652 = vperm.xlu1 %1615, %v565_v52   ;;  %656 = vperm.xlu0 %1614, %v566_v51  }
 0x1e6   : >> { %1616 = vset.pattern.permute.xlu1 %v1793_v54  ;;  %1617 = vset.pattern.permute.xlu0 %v1793_v54 }
 0x1e7   : >> { %688 = vperm.xlu1 %1616, %v559_v40   ;;  %692 = vperm.xlu0 %1617, %v560_v43  }
 0x1eb   : >> { %696 = vperm.xlu1 %1616, %v561_v39   ;;  %704 = vperm.xlu0 %1617, %v563_v49  }
 0x1ef   : >> { %700 = vperm.xlu1 %1616, %v562_v42   ;;  %712 = vperm.xlu0 %1617, %v565_v52  }
 0x1f3   : >> { %708 = vperm.xlu1 %1616, %v564_v48  }
 0x1f7   : >> { %716 = vperm.xlu1 %1616, %v566_v51  }
 0x244   : >> { %v580_v55 = vpop.permute.xlu1 %579  ;;  %v570_v57 = vpop.permute.xlu0 %569 }
 0x245   : >> { %v613_v17 = vsub.f32 %v580_v55, %v2019_v19  ;;  %v611_v18 = vsub.f32 %v570_v57, %v2019_v19 }
 0x247   : >> { %v621_v28 = vmul.f32 %v613_v17, %v613_v17  ;;  %v619_v29 = vmul.f32 %v611_v18, %v611_v18 }
 0x248   : >> { %v585_v4 = vpop.permute.xlu1 %584  ;;  %v575_v6 = vpop.permute.xlu0 %574 }
 0x249   : >> { %v614_v21 = vsub.f32 %v585_v4, %v2019_v19  ;;  %v612_v22 = vsub.f32 %v575_v6, %v2019_v19 }
 0x24b   : >> { %v622_v30 = vmul.f32 %v614_v21, %v614_v21  ;;  %v620_v32 = vmul.f32 %v612_v22, %v612_v22 }
 0x24c   : >> { %v595_v5 = vpop.permute.xlu1 %594  ;;  %v590_v7 = vpop.permute.xlu0 %589 }
 0x24d   : >> { %v616_v60 = vsub.f32 %v595_v5, %v2019_v19  ;;  %v615_v23 = vsub.f32 %v590_v7, %v2019_v19 }
 0x24f   : >> { %v624_v38 = vmul.f32 %v616_v60, %v616_v60  ;;  %v623_v39 = vmul.f32 %v615_v23, %v615_v23 }
 0x250   : >> { %v605_v8 = vpop.permute.xlu1 %604  ;;  %v600_v9 = vpop.permute.xlu0 %599 }
 0x251   : >> { %v618_v24 = vsub.f32 %v605_v8, %v2019_v19  ;;  %v617_v31 = vsub.f32 %v600_v9, %v2019_v19 }
 0x253   : >> { %v626_v40 = vmul.f32 %v618_v24, %v618_v24  ;;  %v625_v46 = vmul.f32 %v617_v31, %v617_v31 }
 0x255   : >> { %v633_v10 = vpop.permute.xlu1 %632  ;;  %v629_v11 = vpop.permute.xlu0 %628 }
 0x256   : >> { %v664_v33 = vsub.f32 %v633_v10, %v2024_v20  ;;  %v663_v41 = vsub.f32 %v629_v11, %v2024_v20 }
 0x258   : >> { %v672_v50 = vmul.f32 %v664_v33, %v664_v33  ;;  %v671_v55 = vmul.f32 %v663_v41, %v663_v41 }
 0x259   : >> { %v637_v12 = vpop.permute.xlu1 %636  ;;  %v641_v14 = vpop.permute.xlu0 %640 }
 0x25a   : >> { %v665_v42 = vsub.f32 %v637_v12, %v2024_v20  ;;  %v666_v43 = vsub.f32 %v641_v14, %v2024_v20  ;;  %v679_v22 = vadd.f32 %v671_v55, %v619_v29 }
 0x25c   : >> { %v673_v5 = vmul.f32 %v665_v42, %v665_v42  ;;  %v674_v7 = vmul.f32 %v666_v43, %v666_v43 }
 0x25d   : >> { %v645_v15 = vpop.permute.xlu1 %644  ;;  %v649_v16 = vpop.permute.xlu0 %648 }
 0x25e   : >> { %v668_v26 = vsub.f32 %v649_v16, %v2024_v20  ;;  %v667_v34 = vsub.f32 %v645_v15, %v2024_v20  ;;  %v680_v15 = vadd.f32 %v672_v50, %v620_v32 }
 0x260   : >> { %v676_v44 = vmul.f32 %v668_v26, %v668_v26  ;;  %v675_v51 = vmul.f32 %v667_v34, %v667_v34 }
 0x261   : >> { %v653_v2 = vpop.permute.xlu1 %652  ;;  %v657_v61 = vpop.permute.xlu0 %656 }
 0x262   : >> { %v669_v35 = vsub.f32 %v653_v2, %v2024_v20  ;;  %v670_v45 = vsub.f32 %v657_v61, %v2024_v20  ;;  %v684_v8 = vadd.f32 %v676_v44, %v624_v38  ;;  %v683_v16 = vadd.f32 %v675_v51, %v623_v39 }
 0x264   : >> { %v677_v52 = vmul.f32 %v669_v35, %v669_v35  ;;  %v678_v9 = vmul.f32 %v670_v45, %v670_v45 }
 0x266   : >> { %v689_v3 = vpop.permute.xlu1 %688  ;;  %v693_v13 = vpop.permute.xlu0 %692  ;;  %v685_v2 = vadd.f32 %v677_v52, %v625_v46  ;;  %v686_v60 = vadd.f32 %v678_v9, %v626_v40 }
 0x267   : >> { %v724_v47 = vsub.f32 %v693_v13, %v2029_v1  ;;  %v723_v53 = vsub.f32 %v689_v3, %v2029_v1 }
 0x269   : >> { %v732_v10 = vmul.f32 %v724_v47, %v724_v47  ;;  %v731_v61 = vmul.f32 %v723_v53, %v723_v53  ;;  %v2099_v47 = vld [vmem:[%s2314_s1 + $0x8] ss:$0 sm:$0xff] (%p536_p13)  ;;  %v2114_v53 = vmov (%p536_p13), 1e+30  }
 0x26a   : >> { %v697_v58 = vpop.permute.xlu1 %696  ;;  %v705_v59 = vpop.permute.xlu0 %704 }
 0x26b   : >> { %v727_v48 = vsub.f32 %v705_v59, %v2029_v1  ;;  %v725_v57 = vsub.f32 %v697_v58, %v2029_v1  ;;  %v681_v58 = vadd.f32 %v673_v5, %v621_v28  ;;  %v682_v59 = vadd.f32 %v674_v7, %v622_v30 }
 0x26c   : >> { %v740_v23 = vadd.f32 %v732_v10, %v680_v15  ;;  %v739_v33 = vadd.f32 %v731_v61, %v679_v22 }
 0x26d   : >> { %v735_v11 = vmul.f32 %v727_v48, %v727_v48  ;;  %v733_v13 = vmul.f32 %v725_v57, %v725_v57  ;;  %v2104_v48 = vld [vmem:[%s2314_s1 + $0x9] ss:$0 sm:$0xff] (%p536_p13) }
 0x26e   : >> { %v701_v36 = vpop.permute.xlu1 %700  ;;  %v713_v37 = vpop.permute.xlu0 %712 }
 0x26f   : >> { %v729_v49 = vsub.f32 %v713_v37, %v2029_v1  ;;  %v726_v4 = vsub.f32 %v701_v36, %v2029_v1  ;;  %v743_v24 = vadd.f32 %v735_v11, %v683_v16  ;;  %v741_v34 = vadd.f32 %v733_v13, %v681_v58 }
 0x271   : >> { %v737_v12 = vmul.f32 %v729_v49, %v729_v49  ;;  %v734_v17 = vmul.f32 %v726_v4, %v726_v4  ;;  %v747_v37 = vmin.f32 %v739_v33, %v743_v24 }
 0x272   : >> { %v709_v54 = vpop.permute.xlu1 %708 }
 0x273   : >> { %v728_v6 = vsub.f32 %v709_v54, %v2029_v1  ;;  %v745_v26 = vadd.f32 %v737_v12, %v685_v2  ;;  %v742_v32 = vadd.f32 %v734_v17, %v682_v59 }
 0x275   : >> { %v736_v14 = vmul.f32 %v728_v6, %v728_v6  ;;  %v749_v38 = vmin.f32 %v741_v34, %v745_v26 }
 0x276   : >> { %v717_v3 = vpop.permute.xlu1 %716 }
 0x277   : >> { %v744_v18 = vadd.f32 %v736_v14, %v684_v8  ;;  %v730_v21 = vsub.f32 %v717_v3, %v2029_v1 }
 0x279   : >> { %v738_v31 = vmul.f32 %v730_v21, %v730_v21  ;;  %v748_v35 = vmin.f32 %v740_v23, %v744_v18 }
 0x27b   : >> { %v746_v36 = vadd.f32 %v738_v31, %v686_v60  ;;  %v751_v41 = vmin.f32 %v747_v37, %v748_v35 }
 0x27d   : >> { %v750_v39 = vmin.f32 %v742_v32, %v746_v36 }
 0x27f   : >> { %v752_v42 = vmin.f32 %v749_v38, %v750_v39 }
 0x281   : >> { %v753_v43 = vmin.f32 %v751_v41, %v752_v42 }
 0x283   : >> { %v754_v44 = vrot.slane %v753_v43, 4 }
 0x285   : >> { %v755_v29 = vmin.f32 %v753_v43, %v754_v44 }
 0x287   : >> { %v756_v28 = vrot.slane %v755_v29, 2 }
 0x289   : >> { %v757_v30 = vmin.f32 %v755_v29, %v756_v28 }
 0x28b   : >> { %v758_v40 = vrot.slane %v757_v30, 1  ;;  %538 = sbr.rel (!%p536_p13) target bundleno = 446 (0x1be), region = 149 }
 0x28d   : >> { %v759_v45 = vmin.f32 %v757_v30, %v758_v40 }
 0x28f   : >> { %v760_v46 = vmin.f32 %v1766_v27, %v759_v45  }
 0x291   : >> { %v2325_v27 = vmov %v760_v46  ;;  %1618 = vrsqrt.f32 (%p536_p13), %v760_v46  ;;  %vm763_vm4 = vcmp.eq.f32.partialorder (%p536_p13), %v760_v46, inf  ;;  %v766_v50 = vand.u32 (%p536_p13), 2147483648, %v760_v46 }
 0x292   : > { %v2109_v27 = vld [vmem:[%s2314_s1 + $0xa] ss:$0 sm:$0xff]  ;;  %vm765_vm5 = vcmp.eq.f32.partialorder %v760_v46, 0.0 }
 0x29b   : > { %v1619_v49 = vpop.eup %1618 }
 0x29c   : > { %v762_v19 = vmul.f32 %v1619_v49, %v760_v46 }
 0x29e   : > { %v764_v20 = vsel %vm763_vm4, %v760_v46, %v762_v19 }
 0x29f   : > { %v767_v1 = vsel %vm765_vm5, %v766_v50, %v764_v20 }
 0x2a0   : > { %v768_v51 = vsub.f32 0.5714286, %v767_v1 }
 0x2a2   : > { %v769_v52 = vmax.f32 %v768_v51, 0.0 }
 0x2a4   : > { %770 = vst.msk [vmem:[%s1895_s14 + $0x1] sm:$0x1] %vm2031_vm3, %v769_v52 }
 0x2a5 LB: >> { %v1794_v54 = vmov 0   ;;  %s1448_s6 = sshll.u32 %s1778_s5, 6  ;;  %v1795_v60 = vmov 1   ;;  %v1796_v23 = vmov 2   ;;  %s779_s5 = sadd.s32 1, %s1778_s5   ;;  %s1778_s5 = sphi %s2116_s5, %s779_s5   ;;  %v1774_v53 = vphi %v2114_v53, %v2326_v53  }
 0x2a6   : >> { %1621 = vset.pattern.permute.xlu1 %v1794_v54  ;;  %1620 = vset.pattern.permute.xlu0 %v1794_v54  ;;  %s782_s8 = scalar_lea.vmem %s1889_s10, %s1448_s6  ;;  %p776_p0 = scmp.ge.s32.totalorder %s779_s5, 2  }
 0x2a7   : >> { %v785_v55 = vld [vmem:[%s782_s8 + $0x10] sm:$0xff]  ;;  %v783_v57 = vld [vmem:[%s782_s8] sm:$0xff]  ;;  %v786_v4 = vld [vmem:[%s782_s8 + $0x18] sm:$0xff]  ;;  %s2192_s28 = smov (%p776_p0), 0  }
 0x2a8   : >> { %v793_v6 = vsub.f32 %v785_v55, %v1933_v56  ;;  %v791_v5 = vsub.f32 %v783_v57, %v1933_v56  ;;  %v794_v7 = vsub.f32 %v786_v4, %v1933_v56  ;;  %v784_v8 = vld [vmem:[%s782_s8 + $0x8] sm:$0xff]  ;;  %v787_v11 = vld [vmem:[%s782_s8 + $0x20] sm:$0xff]  ;;  %v790_v3 = vld [vmem:[%s782_s8 + $0x38] sm:$0xff] }
 0x2a9   : >> { %v788_v9 = vld [vmem:[%s782_s8 + $0x28] sm:$0xff]  ;;  %v792_v10 = vsub.f32 %v784_v8, %v1933_v56  ;;  %v795_v61 = vsub.f32 %v787_v11, %v1933_v56  ;;  %v789_v13 = vld [vmem:[%s782_s8 + $0x30] sm:$0xff]  ;;  %v798_v17 = vsub.f32 %v790_v3, %v1933_v56 }
 0x2aa   : >> { %v801_v12 = vmul.f32 %v1956_v0, %v793_v6  ;;  %v799_v14 = vmul.f32 %v1956_v0, %v791_v5  ;;  %v796_v15 = vsub.f32 %v788_v9, %v1933_v56  ;;  %v802_v16 = vmul.f32 %v1956_v0, %v794_v7 }
 0x2ab   : >> { %v800_v2 = vmul.f32 %v1956_v0, %v792_v10  ;;  %v803_v21 = vmul.f32 %v1956_v0, %v795_v61  ;;  %v797_v22 = vsub.f32 %v789_v13, %v1933_v56  ;;  %v806_v58 = vmul.f32 %v1956_v0, %v798_v17 }
 0x2ac   : >> { %819 = vperm.xlu1 %1621, %v801_v12   ;;  %809 = vperm.xlu0 %1620, %v799_v14   ;;  %v804_v18 = vmul.f32 %v1956_v0, %v796_v15 }
 0x2ad   : >> { %v805_v59 = vmul.f32 %v1956_v0, %v797_v22 }
 0x2b0   : >> { %824 = vperm.xlu1 %1621, %v802_v16   ;;  %814 = vperm.xlu0 %1620, %v800_v2  }
 0x2b4   : >> { %834 = vperm.xlu1 %1621, %v804_v18   ;;  %829 = vperm.xlu0 %1620, %v803_v21  }
 0x2b8   : >> { %844 = vperm.xlu1 %1621, %v806_v58   ;;  %839 = vperm.xlu0 %1620, %v805_v59  }
 0x2bc   : >> { %1623 = vset.pattern.permute.xlu1 %v1795_v60  ;;  %1622 = vset.pattern.permute.xlu0 %v1795_v60 }
 0x2bd   : >> { %872 = vperm.xlu1 %1623, %v800_v2   ;;  %868 = vperm.xlu0 %1622, %v799_v14  }
 0x2c1   : >> { %876 = vperm.xlu1 %1623, %v801_v12   ;;  %880 = vperm.xlu0 %1622, %v802_v16  }
 0x2c5   : >> { %884 = vperm.xlu1 %1623, %v803_v21   ;;  %888 = vperm.xlu0 %1622, %v804_v18  }
 0x2c9   : >> { %892 = vperm.xlu1 %1623, %v805_v59   ;;  %896 = vperm.xlu0 %1622, %v806_v58  }
 0x2cd   : >> { %1624 = vset.pattern.permute.xlu1 %v1796_v23  ;;  %1625 = vset.pattern.permute.xlu0 %v1796_v23 }
 0x2ce   : >> { %928 = vperm.xlu1 %1624, %v799_v14   ;;  %932 = vperm.xlu0 %1625, %v800_v2  }
 0x2d2   : >> { %936 = vperm.xlu1 %1624, %v801_v12   ;;  %944 = vperm.xlu0 %1625, %v803_v21  }
 0x2d6   : >> { %940 = vperm.xlu1 %1624, %v802_v16   ;;  %952 = vperm.xlu0 %1625, %v805_v59  }
 0x2da   : >> { %948 = vperm.xlu1 %1624, %v804_v18  }
 0x2de   : >> { %956 = vperm.xlu1 %1624, %v806_v58  }
 0x32b   : >> { %v820_v24 = vpop.permute.xlu1 %819  ;;  %v810_v26 = vpop.permute.xlu0 %809 }
 0x32c   : >> { %v853_v40 = vsub.f32 %v820_v24, %v2099_v47  ;;  %v851_v45 = vsub.f32 %v810_v26, %v2099_v47 }
 0x32e   : >> { %v861_v54 = vmul.f32 %v853_v40, %v853_v40  ;;  %v859_v55 = vmul.f32 %v851_v45, %v851_v45 }
 0x32f   : >> { %v825_v31 = vpop.permute.xlu1 %824  ;;  %v815_v33 = vpop.permute.xlu0 %814 }
 0x330   : >> { %v854_v46 = vsub.f32 %v825_v31, %v2099_v47  ;;  %v852_v49 = vsub.f32 %v815_v33, %v2099_v47 }
 0x332   : >> { %v862_v57 = vmul.f32 %v854_v46, %v854_v46  ;;  %v860_v6 = vmul.f32 %v852_v49, %v852_v49 }
 0x333   : >> { %v835_v34 = vpop.permute.xlu1 %834  ;;  %v830_v32 = vpop.permute.xlu0 %829 }
 0x334   : >> { %v856_v20 = vsub.f32 %v835_v34, %v2099_v47  ;;  %v855_v1 = vsub.f32 %v830_v32, %v2099_v47 }
 0x336   : >> { %v864_v11 = vmul.f32 %v856_v20, %v856_v20  ;;  %v863_v12 = vmul.f32 %v855_v1, %v855_v1 }
 0x337   : >> { %v845_v35 = vpop.permute.xlu1 %844  ;;  %v840_v36 = vpop.permute.xlu0 %839 }
 0x338   : >> { %v858_v51 = vsub.f32 %v845_v35, %v2099_v47  ;;  %v857_v4 = vsub.f32 %v840_v36, %v2099_v47 }
 0x33a   : >> { %v866_v14 = vmul.f32 %v858_v51, %v858_v51  ;;  %v865_v13 = vmul.f32 %v857_v4, %v857_v4 }
 0x33c   : >> { %v873_v37 = vpop.permute.xlu1 %872  ;;  %v869_v38 = vpop.permute.xlu0 %868 }
 0x33d   : >> { %v904_v5 = vsub.f32 %v873_v37, %v2104_v48  ;;  %v903_v15 = vsub.f32 %v869_v38, %v2104_v48 }
 0x33f   : >> { %v912_v22 = vmul.f32 %v904_v5, %v904_v5  ;;  %v911_v24 = vmul.f32 %v903_v15, %v903_v15 }
 0x340   : >> { %v877_v39 = vpop.permute.xlu1 %876  ;;  %v881_v41 = vpop.permute.xlu0 %880 }
 0x341   : >> { %v905_v16 = vsub.f32 %v877_v39, %v2104_v48  ;;  %v906_v2 = vsub.f32 %v881_v41, %v2104_v48  ;;  %v919_v49 = vadd.f32 %v911_v24, %v859_v55 }
 0x343   : >> { %v913_v34 = vmul.f32 %v905_v16, %v905_v16  ;;  %v914_v32 = vmul.f32 %v906_v2, %v906_v2 }
 0x344   : >> { %v885_v42 = vpop.permute.xlu1 %884  ;;  %v889_v43 = vpop.permute.xlu0 %888 }
 0x345   : >> { %v908_v52 = vsub.f32 %v889_v43, %v2104_v48  ;;  %v907_v7 = vsub.f32 %v885_v42, %v2104_v48  ;;  %v920_v42 = vadd.f32 %v912_v22, %v860_v6 }
 0x347   : >> { %v916_v61 = vmul.f32 %v908_v52, %v908_v52  ;;  %v915_v58 = vmul.f32 %v907_v7, %v907_v7 }
 0x348   : >> { %v893_v44 = vpop.permute.xlu1 %892  ;;  %v897_v29 = vpop.permute.xlu0 %896 }
 0x349   : >> { %v909_v8 = vsub.f32 %v893_v44, %v2104_v48  ;;  %v910_v3 = vsub.f32 %v897_v29, %v2104_v48  ;;  %v924_v35 = vadd.f32 %v916_v61, %v864_v11  ;;  %v923_v43 = vadd.f32 %v915_v58, %v863_v12 }
 0x34b   : >> { %v917_v59 = vmul.f32 %v909_v8, %v909_v8  ;;  %v918_v36 = vmul.f32 %v910_v3, %v910_v3 }
 0x34d   : >> { %v929_v28 = vpop.permute.xlu1 %928  ;;  %v933_v30 = vpop.permute.xlu0 %932  ;;  %v925_v44 = vadd.f32 %v917_v59, %v865_v13  ;;  %v926_v20 = vadd.f32 %v918_v36, %v866_v14 }
 0x34e   : >> { %v964_v17 = vsub.f32 %v933_v30, %v2109_v27  ;;  %v963_v60 = vsub.f32 %v929_v28, %v2109_v27 }
 0x350   : >> { %v972_v37 = vmul.f32 %v964_v17, %v964_v17  ;;  %v971_v29 = vmul.f32 %v963_v60, %v963_v60  ;;  %v2175_v17 = vld [vmem:[%s2314_s1 + $0xc] ss:$0 sm:$0xff] (%p776_p0)  ;;  %v2190_v60 = vmov (%p776_p0), 1e+30  }
 0x351   : >> { %v937_v50 = vpop.permute.xlu1 %936  ;;  %v945_v19 = vpop.permute.xlu0 %944 }
 0x352   : >> { %v967_v18 = vsub.f32 %v945_v19, %v2109_v27  ;;  %v965_v26 = vsub.f32 %v937_v50, %v2109_v27  ;;  %v921_v50 = vadd.f32 %v913_v34, %v861_v54  ;;  %v922_v19 = vadd.f32 %v914_v32, %v862_v57 }
 0x353   : >> { %v980_v1 = vadd.f32 %v972_v37, %v920_v42  ;;  %v979_v5 = vadd.f32 %v971_v29, %v919_v49 }
 0x354   : >> { %v975_v38 = vmul.f32 %v967_v18, %v967_v18  ;;  %v973_v30 = vmul.f32 %v965_v26, %v965_v26  ;;  %v2180_v18 = vld [vmem:[%s2314_s1 + $0xd] ss:$0 sm:$0xff] (%p776_p0) }
 0x355   : >> { %v941_v9 = vpop.permute.xlu1 %940  ;;  %v953_v10 = vpop.permute.xlu0 %952 }
 0x356   : >> { %v969_v21 = vsub.f32 %v953_v10, %v2109_v27  ;;  %v966_v31 = vsub.f32 %v941_v9, %v2109_v27  ;;  %v983_v51 = vadd.f32 %v975_v38, %v923_v43  ;;  %v981_v7 = vadd.f32 %v973_v30, %v921_v50 }
 0x358   : >> { %v977_v39 = vmul.f32 %v969_v21, %v969_v21  ;;  %v974_v40 = vmul.f32 %v966_v31, %v966_v31  ;;  %v987_v10 = vmin.f32 %v979_v5, %v983_v51 }
 0x359   : >> { %v949_v23 = vpop.permute.xlu1 %948 }
 0x35a   : >> { %v968_v33 = vsub.f32 %v949_v23, %v2109_v27  ;;  %v985_v52 = vadd.f32 %v977_v39, %v925_v44  ;;  %v982_v6 = vadd.f32 %v974_v40, %v922_v19 }
 0x35c   : >> { %v976_v41 = vmul.f32 %v968_v33, %v968_v33  ;;  %v989_v11 = vmin.f32 %v981_v7, %v985_v52 }
 0x35d   : >> { %v957_v28 = vpop.permute.xlu1 %956 }
 0x35e   : >> { %v984_v45 = vadd.f32 %v976_v41, %v924_v35  ;;  %v970_v46 = vsub.f32 %v957_v28, %v2109_v27 }
 0x360   : >> { %v978_v4 = vmul.f32 %v970_v46, %v970_v46  ;;  %v988_v8 = vmin.f32 %v980_v1, %v984_v45 }
 0x362   : >> { %v986_v9 = vadd.f32 %v978_v4, %v926_v20  ;;  %v991_v15 = vmin.f32 %v987_v10, %v988_v8 }
 0x364   : >> { %v990_v12 = vmin.f32 %v982_v6, %v986_v9 }
 0x366   : >> { %v992_v16 = vmin.f32 %v989_v11, %v990_v12 }
 0x368   : >> { %v993_v2 = vmin.f32 %v991_v15, %v992_v16 }
 0x36a   : >> { %v994_v61 = vrot.slane %v993_v2, 4 }
 0x36c   : >> { %v995_v55 = vmin.f32 %v993_v2, %v994_v61 }
 0x36e   : >> { %v996_v54 = vrot.slane %v995_v55, 2 }
 0x370   : >> { %v997_v57 = vmin.f32 %v995_v55, %v996_v54 }
 0x372   : >> { %v998_v14 = vrot.slane %v997_v57, 1  ;;  %778 = sbr.rel (!%p776_p0) target bundleno = 677 (0x2a5), region = 160 }
 0x374   : >> { %v999_v3 = vmin.f32 %v997_v57, %v998_v14 }
 0x376   : >> { %v1000_v13 = vmin.f32 %v1774_v53, %v999_v3  }
 0x378   : >> { %v2326_v53 = vmov %v1000_v13  ;;  %1626 = vrsqrt.f32 (%p776_p0), %v1000_v13  ;;  %vm1003_vm6 = vcmp.eq.f32.partialorder (%p776_p0), %v1000_v13, inf  ;;  %v1006_v22 = vand.u32 (%p776_p0), 2147483648, %v1000_v13 }
 0x379   : > { %v2185_v53 = vld [vmem:[%s2314_s1 + $0xe] ss:$0 sm:$0xff]  ;;  %vm1005_vm7 = vcmp.eq.f32.partialorder %v1000_v13, 0.0 }
 0x382   : > { %v1627_v21 = vpop.eup %1626 }
 0x383   : > { %v1002_v47 = vmul.f32 %v1627_v21, %v1000_v13 }
 0x385   : > { %v1004_v48 = vsel %vm1003_vm6, %v1000_v13, %v1002_v47 }
 0x386   : > { %v1007_v27 = vsel %vm1005_vm7, %v1006_v22, %v1004_v48 }
 0x387   : > { %v1008_v58 = vsub.f32 0.5714286, %v1007_v27 }
 0x389   : > { %v1009_v59 = vmax.f32 %v1008_v58, 0.0 }
 0x38b   : > { %1010 = vst.msk [vmem:[%s1895_s14 + $0x2] sm:$0x1] %vm2031_vm3, %v1009_v59 }
 0x38c LB: >> { %v1797_v23 = vmov 0   ;;  %s1452_s30 = sshll.u32 %s1786_s28, 6  ;;  %v1798_v20 = vmov 1   ;;  %v1799_v1 = vmov 2   ;;  %s1019_s28 = sadd.s32 1, %s1786_s28   ;;  %s1786_s28 = sphi %s2192_s28, %s1019_s28   ;;  %v1782_v60 = vphi %v2190_v60, %v2327_v60  }
 0x38d   : >> { %1629 = vset.pattern.permute.xlu1 %v1797_v23  ;;  %1628 = vset.pattern.permute.xlu0 %v1797_v23  ;;  %s1022_s5 = scalar_lea.vmem %s1889_s10, %s1452_s30  ;;  %p1016_p1 = scmp.ge.s32.totalorder %s1019_s28, 2  }
 0x38e   : >> { %v1025_v24 = vld [vmem:[%s1022_s5 + $0x10] sm:$0xff]  ;;  %v1023_v26 = vld [vmem:[%s1022_s5] sm:$0xff]  ;;  %v1026_v31 = vld [vmem:[%s1022_s5 + $0x18] sm:$0xff]  ;;  %vm1251_vm8 = vcmask (%p1016_p1), 16384   ;;  %vm1253_vm9 = vcmask (%p1016_p1), 0   ;;  %s1462_s10 = sshll.u32 (%p1016_p1), %s1847_s19, 6 }
 0x38f   : >> { %v1033_v33 = vsub.f32 %v1025_v24, %v1933_v56  ;;  %v1031_v34 = vsub.f32 %v1023_v26, %v1933_v56  ;;  %v1034_v32 = vsub.f32 %v1026_v31, %v1933_v56  ;;  %v1024_v35 = vld [vmem:[%s1022_s5 + $0x8] sm:$0xff]  ;;  %v1027_v38 = vld [vmem:[%s1022_s5 + $0x20] sm:$0xff]  ;;  %v1030_v28 = vld [vmem:[%s1022_s5 + $0x38] sm:$0xff]  ;;  %1252 = vst.msk [vmem:[%s209_s7] sm:$0x1] (%p1016_p1), %vm1251_vm8, %v1933_v56  ;;  %s1276_s12 = sshll.u32 (%p1016_p1), %s1895_s14, 4  ;;  %s2266_s22 = scalar_lea.hbm (%p1016_p1), %s2315_s2, %s1462_s10  ;;  %s2268_s12 = int_to_ptr.vmem [resolvable:$true] %s1276_s12 }
 0x390   : >> { %v1028_v36 = vld [vmem:[%s1022_s5 + $0x28] sm:$0xff]  ;;  %v1032_v37 = vsub.f32 %v1024_v35, %v1933_v56  ;;  %v1035_v29 = vsub.f32 %v1027_v38, %v1933_v56  ;;  %v1029_v30 = vld [vmem:[%s1022_s5 + $0x30] sm:$0xff]  ;;  %v1038_v40 = vsub.f32 %v1030_v28, %v1933_v56  ;;  %1254 = vst.msk [vmem:[%s212_s13] sm:$0x1] (%p1016_p1), %vm1253_vm9, %v284_v63  ;;  %s1256_s29 = scalar_lea.sflag (%p1016_p1), [#allocation3], %s189_s27  ;;  %s1636_s13 = scalar_lea.vmem (%p1016_p1), %s2268_s12, 64 }
 0x391   : >> { %v1041_v39 = vmul.f32 %v1956_v0, %v1033_v33  ;;  %v1039_v41 = vmul.f32 %v1956_v0, %v1031_v34  ;;  %v1036_v42 = vsub.f32 %v1028_v36, %v1933_v56  ;;  %v1042_v43 = vmul.f32 %v1956_v0, %v1034_v32  ;;  %p1637_p2 = scmp.ne.s32.totalorder (%p1016_p1), %s2268_s12, %s1636_s13  ;;  %s1800_s19 = smov (%p1016_p1), [#allocation2]  }
 0x392   : >> { %v1040_v44 = vmul.f32 %v1956_v0, %v1032_v37  ;;  %v1043_v46 = vmul.f32 %v1956_v0, %v1035_v29  ;;  %v1037_v49 = vsub.f32 %v1029_v30, %v1933_v56  ;;  %v1046_v50 = vmul.f32 %v1956_v0, %v1038_v40  ;;  %s1640_s23 = sshll.u32 (%p1016_p1), %s1800_s19, 4  ;;  %s1641_s23 = int_to_ptr.vmem [resolvable:$false] %s1640_s23 }
 0x393   : >> { %1059 = vperm.xlu1 %1629, %v1041_v39   ;;  %1049 = vperm.xlu0 %1628, %v1039_v41   ;;  %v1044_v45 = vmul.f32 %v1956_v0, %v1036_v42  ;;  %p1638_p3 = pnand (%p1016_p1), %p1637_p2, %p1864_p5  ;;  %s1642_s28 = scalar_lea.vmem (%p1016_p1), %s1641_s23, 128 }
 0x394   : >> { %v1045_v19 = vmul.f32 %v1956_v0, %v1037_v49  ;;  %p1643_p7 = scmp.lt.s32.totalorder (%p1016_p1), %s2268_s12, %s1641_s23  ;;  %p1644_p8 = scmp.lt.s32.totalorder (%p1016_p1), %s1642_s28, %s1636_s13 }
 0x395   : > { %p1639_p4 = pneg (%p1016_p1), %p1638_p3 }
 0x396   : > { %p1645_p9 = por (%p1016_p1), %p1644_p8, %p1643_p7 }
 0x397   : >> { %1064 = vperm.xlu1 %1629, %v1042_v43   ;;  %1054 = vperm.xlu0 %1628, %v1040_v44  }
 0x398   : > { %p1646_p10 = pnand (%p1016_p1), %p1645_p9, %p1639_p4 }
 0x39b   : >> { %1074 = vperm.xlu1 %1629, %v1044_v45   ;;  %1069 = vperm.xlu0 %1628, %v1043_v46  }
 0x39f   : >> { %1084 = vperm.xlu1 %1629, %v1046_v50   ;;  %1079 = vperm.xlu0 %1628, %v1045_v19  }
 0x3a3   : >> { %1631 = vset.pattern.permute.xlu1 %v1798_v20  ;;  %1630 = vset.pattern.permute.xlu0 %v1798_v20 }
 0x3a4   : >> { %1112 = vperm.xlu1 %1631, %v1040_v44   ;;  %1108 = vperm.xlu0 %1630, %v1039_v41  }
 0x3a8   : >> { %1116 = vperm.xlu1 %1631, %v1041_v39   ;;  %1120 = vperm.xlu0 %1630, %v1042_v43  }
 0x3ac   : >> { %1124 = vperm.xlu1 %1631, %v1043_v46   ;;  %1128 = vperm.xlu0 %1630, %v1044_v45  }
 0x3b0   : >> { %1132 = vperm.xlu1 %1631, %v1045_v19   ;;  %1136 = vperm.xlu0 %1630, %v1046_v50  }
 0x3b4   : >> { %1632 = vset.pattern.permute.xlu1 %v1799_v1  ;;  %1633 = vset.pattern.permute.xlu0 %v1799_v1 }
 0x3b5   : >> { %1168 = vperm.xlu1 %1632, %v1039_v41   ;;  %1172 = vperm.xlu0 %1633, %v1040_v44  }
 0x3b9   : >> { %1176 = vperm.xlu1 %1632, %v1041_v39   ;;  %1184 = vperm.xlu0 %1633, %v1043_v46  }
 0x3bd   : >> { %1180 = vperm.xlu1 %1632, %v1042_v43   ;;  %1192 = vperm.xlu0 %1633, %v1045_v19  }
 0x3c1   : >> { %1188 = vperm.xlu1 %1632, %v1044_v45  }
 0x3c5   : >> { %1196 = vperm.xlu1 %1632, %v1046_v50  }
 0x412   : >> { %v1060_v51 = vpop.permute.xlu1 %1059  ;;  %v1050_v52 = vpop.permute.xlu0 %1049 }
 0x413   : >> { %v1093_v14 = vsub.f32 %v1060_v51, %v2175_v17  ;;  %v1091_v3 = vsub.f32 %v1050_v52, %v2175_v17 }
 0x415   : >> { %v1101_v23 = vmul.f32 %v1093_v14, %v1093_v14  ;;  %v1099_v24 = vmul.f32 %v1091_v3, %v1091_v3 }
 0x416   : >> { %v1065_v4 = vpop.permute.xlu1 %1064  ;;  %v1055_v5 = vpop.permute.xlu0 %1054 }
 0x417   : >> { %v1094_v13 = vsub.f32 %v1065_v4, %v2175_v17  ;;  %v1092_v21 = vsub.f32 %v1055_v5, %v2175_v17 }
 0x419   : >> { %v1102_v26 = vmul.f32 %v1094_v13, %v1094_v13  ;;  %v1100_v33 = vmul.f32 %v1092_v21, %v1092_v21 }
 0x41a   : >> { %v1075_v7 = vpop.permute.xlu1 %1074  ;;  %v1070_v6 = vpop.permute.xlu0 %1069 }
 0x41b   : >> { %v1096_v48 = vsub.f32 %v1075_v7, %v2175_v17  ;;  %v1095_v27 = vsub.f32 %v1070_v6, %v2175_v17 }
 0x41d   : >> { %v1104_v38 = vmul.f32 %v1096_v48, %v1096_v48  ;;  %v1103_v39 = vmul.f32 %v1095_v27, %v1095_v27 }
 0x41e   : >> { %v1085_v8 = vpop.permute.xlu1 %1084  ;;  %v1080_v9 = vpop.permute.xlu0 %1079 }
 0x41f   : >> { %v1098_v58 = vsub.f32 %v1085_v8, %v2175_v17  ;;  %v1097_v31 = vsub.f32 %v1080_v9, %v2175_v17 }
 0x421   : >> { %v1106_v41 = vmul.f32 %v1098_v58, %v1098_v58  ;;  %v1105_v30 = vmul.f32 %v1097_v31, %v1097_v31 }
 0x423   : >> { %v1113_v10 = vpop.permute.xlu1 %1112  ;;  %v1109_v11 = vpop.permute.xlu0 %1108 }
 0x424   : >> { %v1144_v34 = vsub.f32 %v1113_v10, %v2180_v18  ;;  %v1143_v42 = vsub.f32 %v1109_v11, %v2180_v18 }
 0x426   : >> { %v1152_v49 = vmul.f32 %v1144_v34, %v1144_v34  ;;  %v1151_v51 = vmul.f32 %v1143_v42, %v1143_v42 }
 0x427   : >> { %v1117_v12 = vpop.permute.xlu1 %1116  ;;  %v1121_v15 = vpop.permute.xlu0 %1120 }
 0x428   : >> { %v1145_v43 = vsub.f32 %v1117_v12, %v2180_v18  ;;  %v1146_v44 = vsub.f32 %v1121_v15, %v2180_v18  ;;  %v1159_v21 = vadd.f32 %v1151_v51, %v1099_v24 }
 0x42a   : >> { %v1153_v7 = vmul.f32 %v1145_v43, %v1145_v43  ;;  %v1154_v6 = vmul.f32 %v1146_v44, %v1146_v44 }
 0x42b   : >> { %v1125_v16 = vpop.permute.xlu1 %1124  ;;  %v1129_v2 = vpop.permute.xlu0 %1128 }
 0x42c   : >> { %v1148_v59 = vsub.f32 %v1129_v2, %v2180_v18  ;;  %v1147_v32 = vsub.f32 %v1125_v16, %v2180_v18  ;;  %v1160_v16 = vadd.f32 %v1152_v49, %v1100_v33 }
 0x42e   : >> { %v1156_v29 = vmul.f32 %v1148_v59, %v1148_v59  ;;  %v1155_v50 = vmul.f32 %v1147_v32, %v1147_v32 }
 0x42f   : >> { %v1133_v61 = vpop.permute.xlu1 %1132  ;;  %v1137_v55 = vpop.permute.xlu0 %1136 }
 0x430   : >> { %v1149_v35 = vsub.f32 %v1133_v61, %v2180_v18  ;;  %v1150_v28 = vsub.f32 %v1137_v55, %v2180_v18  ;;  %v1164_v8 = vadd.f32 %v1156_v29, %v1104_v38  ;;  %v1163_v2 = vadd.f32 %v1155_v50, %v1103_v39 }
 0x432   : >> { %v1157_v19 = vmul.f32 %v1149_v35, %v1149_v35  ;;  %v1158_v9 = vmul.f32 %v1150_v28, %v1150_v28 }
 0x434   : >> { %v1169_v54 = vpop.permute.xlu1 %1168  ;;  %v1173_v57 = vpop.permute.xlu0 %1172  ;;  %v1165_v61 = vadd.f32 %v1157_v19, %v1105_v30  ;;  %v1166_v48 = vadd.f32 %v1158_v9, %v1106_v41 }
 0x435   : >> { %v1204_v40 = vsub.f32 %v1173_v57, %v2185_v53  ;;  %v1203_v20 = vsub.f32 %v1169_v54, %v2185_v53 }
 0x437   : >> { %v1212_v10 = vmul.f32 %v1204_v40, %v1204_v40  ;;  %v1211_v55 = vmul.f32 %v1203_v20, %v1203_v20 }
 0x438   : >> { %v1177_v22 = vpop.permute.xlu1 %1176  ;;  %v1185_v47 = vpop.permute.xlu0 %1184 }
 0x439   : >> { %v1207_v45 = vsub.f32 %v1185_v47, %v2185_v53  ;;  %v1205_v52 = vsub.f32 %v1177_v22, %v2185_v53  ;;  %v1161_v22 = vadd.f32 %v1153_v7, %v1101_v23  ;;  %v1162_v47 = vadd.f32 %v1154_v6, %v1102_v26 }
 0x43a   : >> { %v1220_v27 = vadd.f32 %v1212_v10, %v1160_v16  ;;  %v1219_v34 = vadd.f32 %v1211_v55, %v1159_v21 }
 0x43b   : >> { %v1215_v11 = vmul.f32 %v1207_v45, %v1207_v45  ;;  %v1213_v57 = vmul.f32 %v1205_v52, %v1205_v52 }
 0x43c   : >> { %v1181_v36 = vpop.permute.xlu1 %1180  ;;  %v1193_v37 = vpop.permute.xlu0 %1192 }
 0x43d   : >> { %v1209_v46 = vsub.f32 %v1193_v37, %v2185_v53  ;;  %v1206_v4 = vsub.f32 %v1181_v36, %v2185_v53  ;;  %v1223_v58 = vadd.f32 %v1215_v11, %v1163_v2  ;;  %v1221_v32 = vadd.f32 %v1213_v57, %v1161_v22 }
 0x43f   : >> { %v1217_v12 = vmul.f32 %v1209_v46, %v1209_v46  ;;  %v1214_v14 = vmul.f32 %v1206_v4, %v1206_v4  ;;  %v1227_v37 = vmin.f32 %v1219_v34, %v1223_v58 }
 0x440   : >> { %v1189_v1 = vpop.permute.xlu1 %1188 }
 0x441   : >> { %v1208_v5 = vsub.f32 %v1189_v1, %v2185_v53  ;;  %v1225_v59 = vadd.f32 %v1217_v12, %v1165_v61  ;;  %v1222_v33 = vadd.f32 %v1214_v14, %v1162_v47 }
 0x443   : >> { %v1216_v15 = vmul.f32 %v1208_v5, %v1208_v5  ;;  %v1229_v38 = vmin.f32 %v1221_v32, %v1225_v59 }
 0x444   : >> { %v1197_v54 = vpop.permute.xlu1 %1196 }
 0x445   : >> { %v1224_v3 = vadd.f32 %v1216_v15, %v1164_v8  ;;  %v1210_v13 = vsub.f32 %v1197_v54, %v2185_v53 }
 0x447   : >> { %v1218_v31 = vmul.f32 %v1210_v13, %v1210_v13  ;;  %v1228_v35 = vmin.f32 %v1220_v27, %v1224_v3 }
 0x449   : >> { %v1226_v36 = vadd.f32 %v1218_v31, %v1166_v48  ;;  %v1231_v42 = vmin.f32 %v1227_v37, %v1228_v35 }
 0x44b   : >> { %v1230_v39 = vmin.f32 %v1222_v33, %v1226_v36 }
 0x44d   : >> { %v1232_v43 = vmin.f32 %v1229_v38, %v1230_v39 }
 0x44f   : >> { %v1233_v44 = vmin.f32 %v1231_v42, %v1232_v43 }
 0x451   : >> { %v1234_v29 = vrot.slane %v1233_v44, 4 }
 0x453   : >> { %v1235_v24 = vmin.f32 %v1233_v44, %v1234_v29 }
 0x455   : >> { %v1236_v23 = vrot.slane %v1235_v24, 2 }
 0x457   : >> { %v1237_v26 = vmin.f32 %v1235_v24, %v1236_v23 }
 0x459   : >> { %v1238_v41 = vrot.slane %v1237_v26, 1  ;;  %1018 = sbr.rel (!%p1016_p1) target bundleno = 908 (0x38c), region = 171 }
 0x45b   : >> { %v1239_v28 = vmin.f32 %v1237_v26, %v1238_v41 }
 0x45d   : >> { %v1240_v30 = vmin.f32 %v1782_v60, %v1239_v28  }
 0x45f   : >> { %v2327_v60 = vmov %v1240_v30  ;;  %1634 = vrsqrt.f32 (%p1016_p1), %v1240_v30  ;;  %vm1243_vm10 = vcmp.eq.f32.partialorder (%p1016_p1), %v1240_v30, inf  ;;  %v1246_v17 = vand.u32 (%p1016_p1), 2147483648, %v1240_v30 }
 0x460   : > { %vm1245_vm11 = vcmp.eq.f32.partialorder %v1240_v30, 0.0 }
 0x469   : > { %v1635_v0 = vpop.eup %1634 }
 0x46a   : > { %v1242_v18 = vmul.f32 %v1635_v0, %v1240_v30 }
 0x46c   : > { %v1244_v53 = vsel %vm1243_vm10, %v1240_v30, %v1242_v18 }
 0x46d   : > { %v1247_v60 = vsel %vm1245_vm11, %v1246_v17, %v1244_v53 }
 0x46e   : > { %v1248_v40 = vsub.f32 0.5714286, %v1247_v60 }
 0x470   : > { %v1249_v56 = vmax.f32 %v1248_v40, 0.0 }
 0x472   : > { %1250 = vst.msk [vmem:[%s1895_s14 + $0x3] sm:$0x1] %vm2031_vm3, %v1249_v56 }
 0x473   : > { %1649 = shalt.err (!%p1646_p10)
}
 0x474   : > { %s1650_s27 = scalar_lea.hbm %s2266_s22, 64  ;;  %s1654_s5 = scalar_lea.hbm %s2315_s2, 384 }
 0x475   : > { %p1651_p11 = scmp.ne.s32.totalorder %s2266_s22, %s1650_s27  ;;  %p1655_p0 = scmp.lt.u32.totalorder %s2266_s22, %s2315_s2 }
 0x476   : > { %p1656_p1 = scmp.lt.u32.totalorder %s1654_s5, %s1650_s27  ;;  %p1658_p3 = scmp.lt.u32.totalorder %s1650_s27, %s2266_s22 }
 0x477   : > { %p1652_p12 = pnand %p1651_p11, %p1864_p5 }
 0x478   : > { %p1657_p2 = por %p1656_p1, %p1655_p0 }
 0x479   : > { %p1653_p13 = pneg %p1652_p12 }
 0x47a   : > { %p1659_p4 = por %p1658_p3, %p1657_p2 }
 0x47c   : > { %p1660_p7 = pnand %p1659_p4, %p1653_p13 }
 0x47e   : > { %1663 = shalt.err (!%p1660_p7)
}
 0x47f   : > { %1463 = dma.vmem_to_hbm [thread:$0]  (%p1864_p5), %s2268_s12, 64, %s2266_s22, %s1256_s29  }
 0x480 PF: > { %p1469_p8 = scmp.ge.s32.totalorder %s1742_s18, 2  ;;  %s1294_s9 = sand.u32 1, %s1730_s15  }
 0x481   : > { %s1295_s11 = scalar_lea.sflag [#allocation3], %s1294_s9 }
 0x482   : > { %p1466_p9 = pnand %p1469_p8, %p1868_p6 }
 0x484   : > { %1725 = dma.done.wait (!%p1466_p9), %s1295_s11, 64  }
 0x485   : > { %1727 = vsyncadd (!%p1466_p9), %s1295_s11, 4294967232  ;;  %p15_p10 = scmp.ge.s32.totalorder %s1851_s21, 8   ;;  %s2328_s15 = smov %s1734_s16 }
 0x486   : > { %s2329_s16 = smov %s1738_s17  ;;  %s2330_s17 = smov %s1862_s24 }
 0x487   : > { %s2331_s18 = smov %s1851_s21  ;;  %17 = sbr.rel (!%p15_p10) target bundleno = 3 (0x3), region = 182 }
 0x48e   :  { %1312 = vsyncpa [#allocation3], 1 }
 0x48f   :  { %1314 = vsyncpa [#allocation3 + $0x1], 1 }

</bundles_post_ra>
